<compile_context>
chip_gen: v7x
topology: tpu7x:2x2x1
jax: 0.10.0
libtpu: 0.0.40
codegen_flags: <defaults>
</compile_context>

<pallas_src>
import functools

import jax
import jax.numpy as jnp
from jax import lax
from jax.experimental import pallas as pl
from jax.experimental.pallas import tpu as pltpu


# ----------------------------- in-kernel math helpers -----------------------------

def _silu(x):
    # TODO(synk): on v6e/v7x the EUP has a bf16 path (bf16 sigmoid would relieve the
    # EUP slot); kept f32 because v5e has no bf16 VPU/EUP and for numeric safety.
    return x * jax.nn.sigmoid(x)


def _mxu(a, w_bf16):
    # bf16 x bf16 MXU matmul with f32 accumulation; only the activation is cast.
    return jnp.dot(a.astype(jnp.bfloat16), w_bf16, preferred_element_type=jnp.float32)


def _seg_layernorm(x, gamma, beta, half, eps=1e-5):
    """Per-branch LayerNorm over each `half`-lane segment of a (TB, 2*half) tensor."""
    lanes = lax.broadcasted_iota(jnp.int32, x.shape, 1)
    left = lanes < half
    inv_n = 1.0 / half
    sum_l = jnp.sum(jnp.where(left, x, 0.0), axis=-1, keepdims=True)
    sum_r = jnp.sum(jnp.where(left, 0.0, x), axis=-1, keepdims=True)
    mean = jnp.where(left, sum_l, sum_r) * inv_n
    d = x - mean
    dd = d * d
    ss_l = jnp.sum(jnp.where(left, dd, 0.0), axis=-1, keepdims=True)
    ss_r = jnp.sum(jnp.where(left, 0.0, dd), axis=-1, keepdims=True)
    var = jnp.where(left, ss_l, ss_r) * inv_n
    return d * lax.rsqrt(var + eps) * gamma + beta


# --------------------------------- Pallas kernel -----------------------------------

def _dti_kernel(x_ref, w_in_ref, w_stk_ref, vec_ref, o_ref, *, half):
    # x_ref     : (TB, IN0+IN1)  bf16  streamed activations (x0 | x1)
    # w_in_ref  : (IN0+IN1, 2H)  bf16  block-diagonal input projection
    # w_stk_ref : (3, 2H, 2H)    bf16  block-diagonal [w_a, w_b, w_out(zero-padded)]
    # vec_ref   : (6, 2H)        f32   [b_in, ln1_g, ln1_b, ln2_g, ln2_b, b_out(pad)]
    # o_ref     : (1, 1, TB)     f32   lane-dense per-row dot products
    vec = vec_ref[...]
    b_in, ln1_g, ln1_b = vec[0:1], vec[1:2], vec[2:3]
    ln2_g, ln2_b, b_out = vec[3:4], vec[4:5], vec[5:6]

    # input2hidden: Linear -> SiLU -> Dropout(eval)      [both branches, 128 lanes]
    h = _silu(jnp.dot(x_ref[...], w_in_ref[...],
                      preferred_element_type=jnp.float32) + b_in)
    # residual block: LN -> Linear(no bias) -> SiLU -> Dropout -> Linear(no bias)
    t = _seg_layernorm(h, ln1_g, ln1_b, half)
    t = _silu(_mxu(t, w_stk_ref[0]))
    t = _mxu(t, w_stk_ref[1])
    # post-residual LayerNorm, then hidden2output (latent lanes are zero-padded)
    h = _seg_layernorm(h + t, ln2_g, ln2_b, half)
    z = _mxu(h, w_stk_ref[2]) + b_out                     # (TB, 2H): [z0 | z1]

    # dot-product aggregation: rolling by H swaps the halves, so every lane holds a
    # z0*z1 product; summing all 2H lanes gives 2*sum(z0*z1) (padded lanes exactly 0).
    prod = z * pltpu.roll(z, shift=half, axis=1)
    r = 0.5 * jnp.sum(prod, axis=-1)                      # (TB,)
    o_ref[...] = r[None, None, :]                         # lane-dense store


# ------------------------------ wrapper / packing ----------------------------------

def _block_diag(a, b):
    r0, c0 = a.shape
    r1, c1 = b.shape
    out = jnp.zeros((r0 + r1, c0 + c1), jnp.float32)
    out = out.at[:r0, :c0].set(a)
    out = out.at[r0:, c0:].set(b)
    return out


def _pack_params(params0, params1, hidden_dim):
    """One-time block-diagonal parameter packing (hoisted out of the kernel)."""
    H = hidden_dim

    def pad_out(w_out, b_out):
        L = w_out.shape[1]
        w_p = jnp.zeros((H, H), jnp.float32).at[:, :L].set(w_out)
        b_p = jnp.zeros((1, H), jnp.float32).at[:, :L].set(b_out)
        return w_p, b_p

    (wi0, bi0, g10, be10, wa0, wb0, g20, be20, wo0, bo0) = params0
    (wi1, bi1, g11, be11, wa1, wb1, g21, be21, wo1, bo1) = params1
    wo0p, bo0p = pad_out(wo0, bo0)
    wo1p, bo1p = pad_out(wo1, bo1)

    w_in = _block_diag(wi0, wi1).astype(jnp.bfloat16)                    # (IN0+IN1, 2H)
    w_stack = jnp.stack([_block_diag(wa0, wa1),
                         _block_diag(wb0, wb1),
                         _block_diag(wo0p, wo1p)]).astype(jnp.bfloat16)  # (3, 2H, 2H)
    vec = jnp.stack([jnp.concatenate([bi0, bi1], axis=1)[0],
                     jnp.concatenate([g10, g11], axis=1)[0],
                     jnp.concatenate([be10, be11], axis=1)[0],
                     jnp.concatenate([g20, g21], axis=1)[0],
                     jnp.concatenate([be20, be21], axis=1)[0],
                     jnp.concatenate([bo0p, bo1p], axis=1)[0]]).astype(jnp.float32)
    return w_in, w_stack, vec                                            # vec: (6, 2H)


def _round_up(v, m):
    return -(-v // m) * m


def _choose_batch_tile(B, block_batch):
    SUB = 16                                      # bf16 sublane packing alignment
    big = max(128, _round_up(block_batch, 128))   # large-batch tile, lane-dense
    if B <= SUB:
        TB = SUB
    elif B <= 2 * big:
        # two blocks: fills both v7x TensorCores with minimal padding
        TB = _round_up(-(-B // 2), SUB)
    else:
        TB = big
    return TB, -(-B // TB)


def multi_branch_dti(x0, x1, params0, params1, *, block_batch=512):
    B, in0 = x0.shape
    in1 = x1.shape[1]
    in_tot = in0 + in1
    H = params0[0].shape[1]          # hidden_dim
    H2 = 2 * H

    # one-time parameter packing (in real use: done at model-load time)
    w_in, w_stack, vec = _pack_params(params0, params1, H)

    # single streamed operand: x0|x1 in bf16 (matmul inputs are bf16 anyway)
    x_cat = jnp.concatenate([x0, x1], axis=1).astype(jnp.bfloat16)

    TB, n_blocks = _choose_batch_tile(B, block_batch)
    Bp = TB * n_blocks
    if Bp != B:
        x_cat = jnp.pad(x_cat, ((0, Bp - B), (0, 0)))

    kernel = functools.partial(_dti_kernel, half=H)

    out = pl.pallas_call(
        kernel,
        out_shape=jax.ShapeDtypeStruct((n_blocks, 1, TB), jnp.float32),
        grid=(n_blocks,),
        in_specs=[
            pl.BlockSpec((TB, in_tot), lambda i: (i, 0)),       # streamed activations
            pl.BlockSpec((in_tot, H2), lambda i: (0, 0)),       # VMEM-resident params
            pl.BlockSpec((3, H2, H2), lambda i: (0, 0, 0)),
            pl.BlockSpec((6, H2), lambda i: (0, 0)),
        ],
        out_specs=pl.BlockSpec((1, 1, TB), lambda i: (i, 0, 0)),
        compiler_params=pltpu.CompilerParams(
            dimension_semantics=("parallel",)),
    )(x_cat, w_in, w_stack, vec)

    return out.reshape(Bp)[:B]       # (B,) to match torch.sum(..., dim=1)


# ---------------------------- deterministic parameter init -------------------------

def make_encoder_params(key, input_dim, hidden_dim, latent_dim):
    ks = jax.random.split(key, 6)
    scale = 0.05
    w_in = scale * jax.random.normal(ks[0], (input_dim, hidden_dim), jnp.float32)
    b_in = scale * jax.random.normal(ks[1], (1, hidden_dim), jnp.float32)
    ln1_g = jnp.ones((1, hidden_dim), jnp.float32)
    ln1_b = jnp.zeros((1, hidden_dim), jnp.float32)
    w_a = scale * jax.random.normal(ks[2], (hidden_dim, hidden_dim), jnp.float32)
    w_b = scale * jax.random.normal(ks[3], (hidden_dim, hidden_dim), jnp.float32)
    ln2_g = jnp.ones((1, hidden_dim), jnp.float32)
    ln2_b = jnp.zeros((1, hidden_dim), jnp.float32)
    w_out = scale * jax.random.normal(ks[4], (hidden_dim, latent_dim), jnp.float32)
    b_out = scale * jax.random.normal(ks[5], (1, latent_dim), jnp.float32)
    return (w_in, b_in, ln1_g, ln1_b, w_a, w_b, ln2_g, ln2_b, w_out, b_out)


# ------------------------------------ reference -------------------------------------

def encoder_ref(x, p):
    """Pure-JAX reference mirroring the kernel's bf16-at-matmul-inputs precision."""
    w_in, b_in, ln1_g, ln1_b, w_a, w_b, ln2_g, ln2_b, w_out, b_out = p

    def mm(a, w):
        return jnp.dot(a.astype(jnp.bfloat16), w.astype(jnp.bfloat16),
                       preferred_element_type=jnp.float32)

    def ln(v, g, b):
        m = jnp.mean(v, -1, keepdims=True)
        s = jnp.mean((v - m) ** 2, -1, keepdims=True)
        return (v - m) / jnp.sqrt(s + 1e-5) * g + b

    h = jax.nn.silu(mm(x, w_in) + b_in)
    t = mm(jax.nn.silu(mm(ln(h, ln1_g, ln1_b), w_a)), w_b)
    h = ln(h + t, ln2_g, ln2_b)
    return mm(h, w_out) + b_out


# -------------------------------------- main ----------------------------------------

if __name__ == "__main__":
    B = 200                  # not a multiple of the batch tile -> exercises padding path
    IN0, IN1 = 32, 48        # drug-branch / target-branch input dims
    HIDDEN, LATENT = 64, 32

    key = jax.random.PRNGKey(0)
    k_x0, k_x1, k_p0, k_p1 = jax.random.split(key, 4)

    x0 = jax.random.normal(k_x0, (B, IN0), jnp.float32)
    x1 = jax.random.normal(k_x1, (B, IN1), jnp.float32)

    params0 = make_encoder_params(k_p0, IN0, HIDDEN, LATENT)
    params1 = make_encoder_params(k_p1, IN1, HIDDEN, LATENT)

    y = jax.block_until_ready(multi_branch_dti(x0, x1, params0, params1))

    # sanity check against pure-JAX reference
    y_ref = jnp.sum(encoder_ref(x0, params0) * encoder_ref(x1, params1), axis=1)
    assert y.shape == (B,)
    assert jnp.allclose(y, y_ref, atol=3e-2, rtol=3e-2), float(jnp.max(jnp.abs(y - y_ref)))

    # TODO(synk): variational path (reparameterize + KL loss) not implemented — the chosen
    # config is variational=False, matching the default forward (compute_kl_loss=False).
    print("KERNEL_OK")
</pallas_src>

<mosaic_0001>
module attributes {stable_mosaic.version = 11 : i64} {
  func.func @_dti_kernel(%arg0: i32, %arg1: memref<112x80xbf16, #tpu.memory_space<vmem>>, %arg2: memref<80x128xbf16, #tpu.memory_space<vmem>>, %arg3: memref<3x128x128xbf16, #tpu.memory_space<vmem>>, %arg4: memref<6x128xf32, #tpu.memory_space<vmem>>, %arg5: memref<1x1x112xf32, #tpu.memory_space<vmem>>) attributes {dimension_semantics = [#tpu.dimension_semantics<parallel>], iteration_bounds = array<i64: 2>, scalar_prefetch = 0 : i64, scratch_operands = 0 : i64, tpu.core_type = #tpu.core_type<tc>, window_params = [{transform_indices = @transform_0, window_bounds = array<i64: 112, 80>}, {pipeline_mode = #tpu.pipeline_mode<synchronous>, transform_indices = @transform_1, window_bounds = array<i64: 80, 128>}, {pipeline_mode = #tpu.pipeline_mode<synchronous>, transform_indices = @transform_2, window_bounds = array<i64: 3, 128, 128>}, {pipeline_mode = #tpu.pipeline_mode<synchronous>, transform_indices = @transform_3, window_bounds = array<i64: 6, 128>}, {transform_indices = @transform_4, window_bounds = array<i64: 1, 1, 112>}]} {
    %c0 = arith.constant 0 : index
    %c0_0 = arith.constant 0 : index
    %0 = vector.load %arg4[%c0, %c0_0] : memref<6x128xf32, #tpu.memory_space<vmem>>, vector<6x128xf32>
    %1 = vector.extract_strided_slice %0 {offsets = [0, 0], sizes = [1, 128], strides = [1, 1]} : vector<6x128xf32> to vector<1x128xf32>
    %2 = vector.extract_strided_slice %0 {offsets = [1, 0], sizes = [1, 128], strides = [1, 1]} : vector<6x128xf32> to vector<1x128xf32>
    %3 = vector.extract_strided_slice %0 {offsets = [2, 0], sizes = [1, 128], strides = [1, 1]} : vector<6x128xf32> to vector<1x128xf32>
    %4 = vector.extract_strided_slice %0 {offsets = [3, 0], sizes = [1, 128], strides = [1, 1]} : vector<6x128xf32> to vector<1x128xf32>
    %5 = vector.extract_strided_slice %0 {offsets = [4, 0], sizes = [1, 128], strides = [1, 1]} : vector<6x128xf32> to vector<1x128xf32>
    %6 = vector.extract_strided_slice %0 {offsets = [5, 0], sizes = [1, 128], strides = [1, 1]} : vector<6x128xf32> to vector<1x128xf32>
    %c0_1 = arith.constant 0 : index
    %c0_2 = arith.constant 0 : index
    %7 = vector.load %arg1[%c0_1, %c0_2] : memref<112x80xbf16, #tpu.memory_space<vmem>>, vector<112x80xbf16>
    %c0_3 = arith.constant 0 : index
    %c0_4 = arith.constant 0 : index
    %8 = vector.load %arg2[%c0_3, %c0_4] : memref<80x128xbf16, #tpu.memory_space<vmem>>, vector<80x128xbf16>
    %cst = arith.constant dense<0.000000e+00> : vector<112x128xf32>
    %9 = tpu.matmul %7, %8, %cst {dimension_numbers = #tpu.dot_dimension_numbers<[1], [0], [0], [1], [0, 0, 1, 1], [], []>} : vector<112x80xbf16>, vector<80x128xbf16>, vector<112x128xf32> -> vector<112x128xf32>
    %10 = vector.broadcast %1 : vector<1x128xf32> to vector<112x128xf32>
    %11 = arith.addf %9, %10 : vector<112x128xf32>
    %12 = arith.negf %11 : vector<112x128xf32>
    %13 = math.exp %12 : vector<112x128xf32>
    %cst_5 = arith.constant 1.000000e+00 : f32
    %14 = vector.broadcast %cst_5 : f32 to vector<112x128xf32>
    %15 = arith.addf %14, %13 : vector<112x128xf32>
    %16 = arith.divf %14, %15 : vector<112x128xf32>
    %17 = arith.mulf %11, %16 : vector<112x128xf32>
    %18 = tpu.iota {dimensions = array<i32: 1>} : vector<112x128xi32>
    %c64_i32 = arith.constant 64 : i32
    %19 = vector.broadcast %c64_i32 : i32 to vector<112x128xi32>
    %20 = arith.cmpi slt, %18, %19 : vector<112x128xi32>
    %cst_6 = arith.constant 0.000000e+00 : f32
    %21 = vector.broadcast %cst_6 : f32 to vector<112x128xf32>
    %22 = arith.select %20, %17, %21 : vector<112x128xi1>, vector<112x128xf32>
    %cst_7 = arith.constant dense<0.000000e+00> : vector<112xf32>
    %23 = vector.multi_reduction <add>, %22, %cst_7 [1] : vector<112x128xf32> to vector<112xf32>
    %24 = vector.shape_cast %23 : vector<112xf32> to vector<112x1xf32>
    %cst_8 = arith.constant 0.000000e+00 : f32
    %25 = vector.broadcast %cst_8 : f32 to vector<112x128xf32>
    %26 = arith.select %20, %25, %17 : vector<112x128xi1>, vector<112x128xf32>
    %cst_9 = arith.constant dense<0.000000e+00> : vector<112xf32>
    %27 = vector.multi_reduction <add>, %26, %cst_9 [1] : vector<112x128xf32> to vector<112xf32>
    %28 = vector.shape_cast %27 : vector<112xf32> to vector<112x1xf32>
    %29 = vector.shape_cast %24 : vector<112x1xf32> to vector<112x1xf32>
    %30 = vector.broadcast %29 : vector<112x1xf32> to vector<112x128xf32>
    %31 = vector.shape_cast %28 : vector<112x1xf32> to vector<112x1xf32>
    %32 = vector.broadcast %31 : vector<112x1xf32> to vector<112x128xf32>
    %33 = arith.select %20, %30, %32 : vector<112x128xi1>, vector<112x128xf32>
    %cst_10 = arith.constant 1.562500e-02 : f32
    %34 = vector.broadcast %cst_10 : f32 to vector<112x128xf32>
    %35 = arith.mulf %33, %34 : vector<112x128xf32>
    %36 = arith.subf %17, %35 : vector<112x128xf32>
    %37 = arith.mulf %36, %36 : vector<112x128xf32>
    %cst_11 = arith.constant 0.000000e+00 : f32
    %38 = vector.broadcast %cst_11 : f32 to vector<112x128xf32>
    %39 = arith.select %20, %37, %38 : vector<112x128xi1>, vector<112x128xf32>
    %cst_12 = arith.constant dense<0.000000e+00> : vector<112xf32>
    %40 = vector.multi_reduction <add>, %39, %cst_12 [1] : vector<112x128xf32> to vector<112xf32>
    %41 = vector.shape_cast %40 : vector<112xf32> to vector<112x1xf32>
    %cst_13 = arith.constant 0.000000e+00 : f32
    %42 = vector.broadcast %cst_13 : f32 to vector<112x128xf32>
    %43 = arith.select %20, %42, %37 : vector<112x128xi1>, vector<112x128xf32>
    %cst_14 = arith.constant dense<0.000000e+00> : vector<112xf32>
    %44 = vector.multi_reduction <add>, %43, %cst_14 [1] : vector<112x128xf32> to vector<112xf32>
    %45 = vector.shape_cast %44 : vector<112xf32> to vector<112x1xf32>
    %46 = vector.shape_cast %41 : vector<112x1xf32> to vector<112x1xf32>
    %47 = vector.broadcast %46 : vector<112x1xf32> to vector<112x128xf32>
    %48 = vector.shape_cast %45 : vector<112x1xf32> to vector<112x1xf32>
    %49 = vector.broadcast %48 : vector<112x1xf32> to vector<112x128xf32>
    %50 = arith.select %20, %47, %49 : vector<112x128xi1>, vector<112x128xf32>
    %cst_15 = arith.constant 1.562500e-02 : f32
    %51 = vector.broadcast %cst_15 : f32 to vector<112x128xf32>
    %52 = arith.mulf %50, %51 : vector<112x128xf32>
    %cst_16 = arith.constant 9.99999974E-6 : f32
    %53 = vector.broadcast %cst_16 : f32 to vector<112x128xf32>
    %54 = arith.addf %52, %53 : vector<112x128xf32>
    %55 = math.rsqrt %54 : vector<112x128xf32>
    %56 = arith.mulf %36, %55 : vector<112x128xf32>
    %57 = vector.broadcast %2 : vector<1x128xf32> to vector<112x128xf32>
    %58 = arith.mulf %56, %57 : vector<112x128xf32>
    %59 = vector.broadcast %3 : vector<1x128xf32> to vector<112x128xf32>
    %60 = arith.addf %58, %59 : vector<112x128xf32>
    %c0_17 = arith.constant 0 : index
    %c0_18 = arith.constant 0 : index
    %c0_19 = arith.constant 0 : index
    %61 = vector.load %arg3[%c0_17, %c0_18, %c0_19] : memref<3x128x128xbf16, #tpu.memory_space<vmem>>, vector<1x128x128xbf16>
    %62 = vector.shape_cast %61 : vector<1x128x128xbf16> to vector<128x128xbf16>
    %63 = arith.truncf %60 : vector<112x128xf32> to vector<112x128xbf16>
    %cst_20 = arith.constant dense<0.000000e+00> : vector<112x128xf32>
    %64 = tpu.matmul %63, %62, %cst_20 {dimension_numbers = #tpu.dot_dimension_numbers<[1], [0], [0], [1], [0, 0, 1, 1], [], []>} : vector<112x128xbf16>, vector<128x128xbf16>, vector<112x128xf32> -> vector<112x128xf32>
    %65 = arith.negf %64 : vector<112x128xf32>
    %66 = math.exp %65 : vector<112x128xf32>
    %cst_21 = arith.constant 1.000000e+00 : f32
    %67 = vector.broadcast %cst_21 : f32 to vector<112x128xf32>
    %68 = arith.addf %67, %66 : vector<112x128xf32>
    %69 = arith.divf %67, %68 : vector<112x128xf32>
    %70 = arith.mulf %64, %69 : vector<112x128xf32>
    %c1 = arith.constant 1 : index
    %c0_22 = arith.constant 0 : index
    %c0_23 = arith.constant 0 : index
    %71 = vector.load %arg3[%c1, %c0_22, %c0_23] : memref<3x128x128xbf16, #tpu.memory_space<vmem>>, vector<1x128x128xbf16>
    %72 = vector.shape_cast %71 : vector<1x128x128xbf16> to vector<128x128xbf16>
    %73 = arith.truncf %70 : vector<112x128xf32> to vector<112x128xbf16>
    %cst_24 = arith.constant dense<0.000000e+00> : vector<112x128xf32>
    %74 = tpu.matmul %73, %72, %cst_24 {dimension_numbers = #tpu.dot_dimension_numbers<[1], [0], [0], [1], [0, 0, 1, 1], [], []>} : vector<112x128xbf16>, vector<128x128xbf16>, vector<112x128xf32> -> vector<112x128xf32>
    %75 = arith.addf %17, %74 : vector<112x128xf32>
    %76 = tpu.iota {dimensions = array<i32: 1>} : vector<112x128xi32>
    %c64_i32_25 = arith.constant 64 : i32
    %77 = vector.broadcast %c64_i32_25 : i32 to vector<112x128xi32>
    %78 = arith.cmpi slt, %76, %77 : vector<112x128xi32>
    %cst_26 = arith.constant 0.000000e+00 : f32
    %79 = vector.broadcast %cst_26 : f32 to vector<112x128xf32>
    %80 = arith.select %78, %75, %79 : vector<112x128xi1>, vector<112x128xf32>
    %cst_27 = arith.constant dense<0.000000e+00> : vector<112xf32>
    %81 = vector.multi_reduction <add>, %80, %cst_27 [1] : vector<112x128xf32> to vector<112xf32>
    %82 = vector.shape_cast %81 : vector<112xf32> to vector<112x1xf32>
    %cst_28 = arith.constant 0.000000e+00 : f32
    %83 = vector.broadcast %cst_28 : f32 to vector<112x128xf32>
    %84 = arith.select %78, %83, %75 : vector<112x128xi1>, vector<112x128xf32>
    %cst_29 = arith.constant dense<0.000000e+00> : vector<112xf32>
    %85 = vector.multi_reduction <add>, %84, %cst_29 [1] : vector<112x128xf32> to vector<112xf32>
    %86 = vector.shape_cast %85 : vector<112xf32> to vector<112x1xf32>
    %87 = vector.shape_cast %82 : vector<112x1xf32> to vector<112x1xf32>
    %88 = vector.broadcast %87 : vector<112x1xf32> to vector<112x128xf32>
    %89 = vector.shape_cast %86 : vector<112x1xf32> to vector<112x1xf32>
    %90 = vector.broadcast %89 : vector<112x1xf32> to vector<112x128xf32>
    %91 = arith.select %78, %88, %90 : vector<112x128xi1>, vector<112x128xf32>
    %cst_30 = arith.constant 1.562500e-02 : f32
    %92 = vector.broadcast %cst_30 : f32 to vector<112x128xf32>
    %93 = arith.mulf %91, %92 : vector<112x128xf32>
    %94 = arith.subf %75, %93 : vector<112x128xf32>
    %95 = arith.mulf %94, %94 : vector<112x128xf32>
    %cst_31 = arith.constant 0.000000e+00 : f32
    %96 = vector.broadcast %cst_31 : f32 to vector<112x128xf32>
    %97 = arith.select %78, %95, %96 : vector<112x128xi1>, vector<112x128xf32>
    %cst_32 = arith.constant dense<0.000000e+00> : vector<112xf32>
    %98 = vector.multi_reduction <add>, %97, %cst_32 [1] : vector<112x128xf32> to vector<112xf32>
    %99 = vector.shape_cast %98 : vector<112xf32> to vector<112x1xf32>
    %cst_33 = arith.constant 0.000000e+00 : f32
    %100 = vector.broadcast %cst_33 : f32 to vector<112x128xf32>
    %101 = arith.select %78, %100, %95 : vector<112x128xi1>, vector<112x128xf32>
    %cst_34 = arith.constant dense<0.000000e+00> : vector<112xf32>
    %102 = vector.multi_reduction <add>, %101, %cst_34 [1] : vector<112x128xf32> to vector<112xf32>
    %103 = vector.shape_cast %102 : vector<112xf32> to vector<112x1xf32>
    %104 = vector.shape_cast %99 : vector<112x1xf32> to vector<112x1xf32>
    %105 = vector.broadcast %104 : vector<112x1xf32> to vector<112x128xf32>
    %106 = vector.shape_cast %103 : vector<112x1xf32> to vector<112x1xf32>
    %107 = vector.broadcast %106 : vector<112x1xf32> to vector<112x128xf32>
    %108 = arith.select %78, %105, %107 : vector<112x128xi1>, vector<112x128xf32>
    %cst_35 = arith.constant 1.562500e-02 : f32
    %109 = vector.broadcast %cst_35 : f32 to vector<112x128xf32>
    %110 = arith.mulf %108, %109 : vector<112x128xf32>
    %cst_36 = arith.constant 9.99999974E-6 : f32
    %111 = vector.broadcast %cst_36 : f32 to vector<112x128xf32>
    %112 = arith.addf %110, %111 : vector<112x128xf32>
    %113 = math.rsqrt %112 : vector<112x128xf32>
    %114 = arith.mulf %94, %113 : vector<112x128xf32>
    %115 = vector.broadcast %4 : vector<1x128xf32> to vector<112x128xf32>
    %116 = arith.mulf %114, %115 : vector<112x128xf32>
    %117 = vector.broadcast %5 : vector<1x128xf32> to vector<112x128xf32>
    %118 = arith.addf %116, %117 : vector<112x128xf32>
    %c2 = arith.constant 2 : index
    %c0_37 = arith.constant 0 : index
    %c0_38 = arith.constant 0 : index
    %119 = vector.load %arg3[%c2, %c0_37, %c0_38] : memref<3x128x128xbf16, #tpu.memory_space<vmem>>, vector<1x128x128xbf16>
    %120 = vector.shape_cast %119 : vector<1x128x128xbf16> to vector<128x128xbf16>
    %121 = arith.truncf %118 : vector<112x128xf32> to vector<112x128xbf16>
    %cst_39 = arith.constant dense<0.000000e+00> : vector<112x128xf32>
    %122 = tpu.matmul %121, %120, %cst_39 {dimension_numbers = #tpu.dot_dimension_numbers<[1], [0], [0], [1], [0, 0, 1, 1], [], []>} : vector<112x128xbf16>, vector<128x128xbf16>, vector<112x128xf32> -> vector<112x128xf32>
    %123 = vector.broadcast %6 : vector<1x128xf32> to vector<112x128xf32>
    %124 = arith.addf %122, %123 : vector<112x128xf32>
    %c64_i32_40 = arith.constant 64 : i32
    %125 = tpu.dynamic_rotate %124 by %c64_i32_40 dim 1 : vector<112x128xf32>, i32 -> vector<112x128xf32>
    %126 = arith.mulf %124, %125 : vector<112x128xf32>
    %cst_41 = arith.constant dense<0.000000e+00> : vector<112xf32>
    %127 = vector.multi_reduction <add>, %126, %cst_41 [1] : vector<112x128xf32> to vector<112xf32>
    %cst_42 = arith.constant 5.000000e-01 : f32
    %128 = vector.broadcast %cst_42 : f32 to vector<112xf32>
    %129 = arith.mulf %128, %127 : vector<112xf32>
    %130 = vector.shape_cast %129 : vector<112xf32> to vector<1x1x112xf32>
    %c0_43 = arith.constant 0 : index
    %c0_44 = arith.constant 0 : index
    %c0_45 = arith.constant 0 : index
    %131 = vector.load %arg5[%c0_43, %c0_44, %c0_45] : memref<1x1x112xf32, #tpu.memory_space<vmem>>, vector<1x1x112xf32>
    tpu.vector_store %arg5[%c0_43, %c0_44, %c0_45], %130 {strides = array<i32>} : memref<1x1x112xf32, #tpu.memory_space<vmem>>, vector<1x1x112xf32>,
    return
  }
  func.func @transform_0(%arg0: i32) -> (i32, i32) {
    %c0_i32 = arith.constant 0 : i32
    %c0_i32_0 = arith.constant 0 : i32
    return %arg0, %c0_i32 : i32, i32
  }
  func.func @transform_1(%arg0: i32) -> (i32, i32) {
    %c0_i32 = arith.constant 0 : i32
    %c0_i32_0 = arith.constant 0 : i32
    %c0_i32_1 = arith.constant 0 : i32
    return %c0_i32, %c0_i32_0 : i32, i32
  }
  func.func @transform_2(%arg0: i32) -> (i32, i32, i32) {
    %c0_i32 = arith.constant 0 : i32
    %c0_i32_0 = arith.constant 0 : i32
    %c0_i32_1 = arith.constant 0 : i32
    %c0_i32_2 = arith.constant 0 : i32
    return %c0_i32, %c0_i32_0, %c0_i32_1 : i32, i32, i32
  }
  func.func @transform_3(%arg0: i32) -> (i32, i32) {
    %c0_i32 = arith.constant 0 : i32
    %c0_i32_0 = arith.constant 0 : i32
    %c0_i32_1 = arith.constant 0 : i32
    return %c0_i32, %c0_i32_0 : i32, i32
  }
  func.func @transform_4(%arg0: i32) -> (i32, i32, i32) {
    %c0_i32 = arith.constant 0 : i32
    %c0_i32_0 = arith.constant 0 : i32
    %c0_i32_1 = arith.constant 0 : i32
    return %arg0, %c0_i32, %c0_i32_0 : i32, i32, i32
  }
}

</mosaic_0001>

<bundles_post_ra>
// kernel: tpu_custom_call.1
= control target key start
LH: loop header
LB: loop body
LE: loop exit
PB: predicated region body
PF: predicated region fallthrough
CT: control target
= control target key end

     0   :  { %9 = vsyncpa [#allocation3], 0  ;;  %s3937_s0 = inlined_call_operand.vmem [shape: bf16[224,80], index: 0, kind: input, shape index: {}]   ;;  %s3938_s1 = inlined_call_operand.hbm [shape: bf16[80,128], index: 1, kind: input, shape index: {}]   ;;  %s3939_s2 = inlined_call_operand.vmem [shape: bf16[3,128,128], index: 2, kind: input, shape index: {}]   ;;  %s3940_s3 = inlined_call_operand.vmem [shape: f32[6,128], index: 3, kind: input, shape index: {}]   ;;  %s3941_s4 = inlined_call_operand.hbm [shape: f32[2,1,112], index: 4, kind: output, shape index: {}]  }
   0x1   :  { %10 = vsyncpa [#allocation4], 0 }
   0x2   :  { %12 = vsyncpa [#allocation4 + $0x1], 0  ;;  %s2781_s15 = smov 0   ;;  %s2783_s16 = smov 0  }
   0x3   :  { %s2785_s17 = smov 0   ;;  %s2787_s18 = smov 0  }
   0x4 LB: > { %s2802_s19 = sadd.s32 4294967295, %s2747_s18   ;;  %s2053_s20 = sadd.s32 4294967294, %s2747_s18   ;;  %s2747_s18 = sphi %s2787_s18, %s3957_s18   ;;  %s2743_s17 = sphi %s2785_s17, %s3956_s17   ;;  %s2739_s16 = sphi %s2783_s16, %s3955_s16   ;;  %s2735_s15 = sphi %s2781_s15, %s3954_s15  }
   0x5   : > { %s2806_s21 = sadd.s32 1, %s2747_s18   ;;  %s114_s22 = sadd.s32 1, %s2743_s17 }
   0x6   : > { %s111_s23 = ssub.s32 %s2747_s18, %s2806_s21  ;;  %p124_p0 = scmp.ne.s32.totalorder %s2743_s17, %s2739_s16 }
   0x7   : > { %p112_p1 = scmp.eq.s32.totalorder %s111_s23, 0  ;;  %p125_p2 = scmp.eq.s32.totalorder %s2802_s19, 1 }
   0x8   : > { %p130_p3 = scmp.ne.s32.totalorder %s2739_s16, %s2735_s15  ;;  %p131_p4 = scmp.eq.s32.totalorder %s2053_s20, 1 }
   0x9   : > { %s2817_s24 = scalar_select %p112_p1, %s2743_s17, %s114_s22  }
   0xa   : > { %p2819_p5 = por %p125_p2, %p124_p0  ;;  %p2823_p6 = por %p131_p4, %p130_p3 }
   0xb   : > { %p2054_p7 = scmp.ge.s32.totalorder %s2747_s18, 1  ;;  %p138_p8 = scmp.lt.s32.totalorder %s2747_s18, 3 }
   0xc   : > { %s3945_s25 = scalar_select %p2819_p5, 1, 0 }
   0xd   : > { %s3946_s26 = scalar_select %p2823_p6, 1, 0 }
   0xe   : > { %p3942_p9 = scmp.eq.s32.totalorder %s2802_s19, 0  ;;  %p2830_p10 = pnand %p2054_p7, %p138_p8 }
   0xf   : > { %s2749_s28 = smov [#allocation2]   ;;  %s2653_s7 = scalar_lea.hbm %s3938_s1, 640 }
  0x10   : > { %s3947_s27 = scalar_select %p2830_p10, 1, 0 }
  0x11   : > { %s150_s29 = sshll.u32 %s2749_s28, 4  ;;  %p2399_p11 = pneg %p2830_p10  ;;  %s151_s29 = int_to_ptr.vmem [resolvable:$true] %s150_s29 }
  0x12   : > { %p2654_p13 = scmp.ne.s32.totalorder %s3938_s1, %s2653_s7  ;;  %p2660_p3 = scmp.lt.u32.totalorder %s2653_s7, %s3938_s1 }
  0x13   : > { %p2838_p12 = pnand %p3942_p9, %p2399_p11 }
  0x15   : > { %p2655_p0 = pneg %p2838_p12 }
  0x17   : > { %p2656_p1 = pnand %p2655_p0, %p2654_p13 }
  0x19   : > { %p2657_p2 = pneg %p2656_p1 }
  0x1b   : > { %p2662_p4 = pnand %p2660_p3, %p2657_p2 }
  0x1d   : > { %2665 = shalt.err (!%p2662_p4)
}
  0x1e   : > { %s2666_s12 = scalar_lea.vmem %s151_s29, 640  ;;  %p2674_p9 = scmp.lt.s32.totalorder %s151_s29, %s151_s29 }
  0x1f   : > { %p2667_p7 = scmp.ne.s32.totalorder %s151_s29, %s2666_s12  ;;  %p2675_p6 = scmp.lt.s32.totalorder %s2666_s12, %s2666_s12 }
  0x21   : > { %p2669_p8 = pnand %p2667_p7, %p2655_p0  ;;  %p2676_p5 = por %p2675_p6, %p2674_p9 }
  0x23   : > { %p2670_p11 = pneg %p2669_p8 }
  0x25   : > { %p2677_p10 = pnand %p2676_p5, %p2670_p11 }
  0x27   : > { %2680 = shalt.err (!%p2677_p10)
}
  0x28   : > { %s2750_s13 = smov 64   ;;  %s2751_s14 = smov 4  }
  0x29   : > { %2402 = dma.hbm_to_vmem [thread:$0]  (!%p2838_p12), %s3938_s1, 640, %s151_s29, [#allocation3], %s2750_s13, %s2750_s13, %s2751_s14  }
  0x2a   : > { %p3949_p13 = scmp.ne.s32.totalorder %s3947_s27, 0 }
  0x2b   : > { %p3950_p1 = scmp.eq.s32.totalorder (!%p3949_p13), %s2802_s19, 0 }
  0x2c   : > { %181 = sbr.rel (%p3949_p13) target bundleno = 1970 (0x7b2), region = 36 }
  0x33   : > { %2726 = dma.done.wait (%p3950_p1), [#allocation3], 640   ;;  %p3951_p0 = pmov %p3950_p1 }
  0x34   : > { %s206_s23 = smul.u32 14, %s2802_s19  ;;  %v2752_v0 = vmov 0.0   ;;  %vm2753_vm0 = vmmov 0   ;;  %v2448_v1 = vld [vmem:[#allocation2] sm:$0xff]   ;;  %v2449_v2 = vld [vmem:[#allocation2 + $0x8] sm:$0xff]   ;;  %v2450_v3 = vld [vmem:[#allocation2 + $0x10] sm:$0xff]   ;;  %v238_v13 = vlaneseq }
  0x35   : > { %2728 = vsyncadd (%p3951_p0), [#allocation3], 4294966656  ;;  %2223 = vmatprep.subr.bf16.mxu0 %v2752_v0  ;;  %2233 = vmatprep.mubr.msk.bf16.mxu0 %vm2753_vm0, %v2752_v0  ;;  %v2451_v4 = vld [vmem:[#allocation2 + $0x18] sm:$0xff]   ;;  %v2452_v5 = vld [vmem:[#allocation2 + $0x20] sm:$0xff]   ;;  %vm307_vm1 = vcmask 654336   ;;  %s2754_s6 = smov 64  }
  0x36   : > { %p207_p5 = scmp.lt.s32.totalorder %s206_s23, 27  ;;  %2261 = vmatprep.subr.bf16.mxu1 %v2752_v0  ;;  %2277 = vmatprep.mubr.msk.bf16.mxu1 %vm2753_vm0, %v2752_v0  ;;  %v2909_v14 = vshrl.u32 %v238_v13, 7  ;;  %v2915_v16 = vld [vmem:[%s3940_s3] sm:$0x3f]  ;;  %v2938_v47 = vand.u32 127, %v238_v13  ;;  %vm1884_vm3 = vcmask 130112  }
  0x37   : > { %2224 = vmatpush3.bf16.msra.mxu0 %v2448_v1  ;;  %vm1891_vm4 = vcmask 195712   ;;  %vm1898_vm5 = vcmask 261312   ;;  %vm1905_vm6 = vcmask 326912   ;;  %vm1912_vm7 = vcmask 392512   ;;  %s204_s7 = sand.u32 1, %s2739_s16   ;;  %s2163_s8 = sshll.u32 %s2802_s19, 4 }
  0x38   : > { %s3959_s23 = smov (!%p207_p5, %s206_s23), 27  ;;  %2225 = vmatprep.subr.bf16.mxu0 %v2752_v0  ;;  %v240_v15 = vsub.s32 0, %v2909_v14  ;;  %vm518_vm2 = vcmp.lt.s32.totalorder %v2938_v47, 64  ;;  %vm1919_vm8 = vcmask 458112   ;;  %vm1926_vm9 = vcmask 523712   ;;  %s205_s9 = scalar_lea.vmem [#allocation5], %s204_s7 }
  0x39   : > { %s2059_s27 = sshll.u32 %s3959_s23, 2  ;;  %vm1933_vm10 = vcmask 589312   ;;  %vm1940_vm11 = vcmask 654912   ;;  %vm1947_vm12 = vcmask 720512   ;;  %vm1954_vm13 = vcmask 786112   ;;  %s1986_s10 = sshll.u32 %s205_s9, 4  ;;  %s3897_s10 = int_to_ptr.vmem [resolvable:$true] %s1986_s10 }
  0x3a   : > { %s2875_s30 = scalar_lea.vmem %s3937_s0, %s2059_s27  ;;  %v2918_v17 = vrot.slane %v2915_v16, %v240_v15  ;;  %vm1961_vm14 = vcmask 851712   ;;  %vm1968_vm15 = vcmask 917312   ;;  %s3895_s13 = scalar_lea.hbm %s3941_s4, %s2163_s8 }
  0x3b   : > { %2226 = vmatpush3.bf16.msra.mxu0 %v2449_v2  ;;  %v2453_v6 = vld [vmem:[%s2875_s30] sm:$0xff]   ;;  %v2454_v7 = vld [vmem:[%s2875_s30 + $0x8] sm:$0xff]   ;;  %v2455_v8 = vld [vmem:[%s2875_s30 + $0x10] sm:$0xff]   ;;  %s1974_s19 = scalar_lea.sflag [#allocation4], %s204_s7  ;;  %s2681_s14 = scalar_lea.vmem %s3897_s10, 16 }
  0x3c   : > { %2227 = vmatprep.subr.bf16.mxu0 %v2752_v0  ;;  %v2456_v9 = vld [vmem:[%s2875_s30 + $0x18] sm:$0xff]   ;;  %v2457_v10 = vld [vmem:[%s2875_s30 + $0x20] sm:$0xff]   ;;  %v2458_v11 = vld [vmem:[%s2875_s30 + $0x28] sm:$0xff]   ;;  %p2682_p6 = scmp.ne.s32.totalorder %s3897_s10, %s2681_s14  ;;  %p3952_p9 = scmp.ne.s32.totalorder %s3945_s25, 0 }
  0x3d   : > { %v2459_v12 = vld [vmem:[%s2875_s30 + $0x30] sm:$0xff]   ;;  %s2755_s20 = smov [#allocation5]  }
  0x3e   : > { %p2683_p10 = pnand %p2682_p6, %p3952_p9  ;;  %s2685_s22 = sshll.u32 %s2755_s20, 4  ;;  %s2686_s22 = int_to_ptr.vmem [resolvable:$false] %s2685_s22 }
  0x3f   : > { %2228 = vmatpush3.bf16.msra.mxu0 %v2450_v3  ;;  %s2687_s23 = scalar_lea.vmem %s2686_s22, 32  ;;  %p2688_p2 = scmp.lt.s32.totalorder %s3897_s10, %s2686_s22 }
  0x40   : > { %2229 = vmatprep.subr.bf16.mxu0 %v2752_v0  ;;  %p2684_p12 = pneg %p2683_p10  ;;  %p2689_p3 = scmp.lt.s32.totalorder %s2687_s23, %s2681_s14 }
  0x42   : > { %p2690_p4 = por %p2689_p3, %p2688_p2 }
  0x43   : > { %2230 = vmatpush3.bf16.msra.mxu0 %v2451_v4 }
  0x44   : > { %2231 = vmatprep.subr.bf16.mxu0 %v2752_v0  ;;  %p2691_p7 = pnand %p2690_p4, %p2684_p12 }
  0x47   : > { %2232 = vmatpush3.bf16.msra.mxu0 %v2452_v5 }
  0x48   : > { %2305 = vmatprep.subr.bf16.mxu0 %v2752_v0 }
  0x4a   : > { %2234 = vmatmul.mubr.msk.bf16.vlgmr.msra.gmra.mrb[0].mxu0 %vm307_vm1, %v2453_v6 }
  0x4b   : > { %2237 = vmatprep.mubr.msk.bf16.mxu0 %vm2753_vm0, %v2752_v0 }
  0x52   : > { %2238 = vmatmul.mubr.msk.bf16.gmra.mrb[4].mxu0 %vm307_vm1, %v2454_v7 }
  0x53   : > { %2241 = vmatprep.mubr.msk.bf16.mxu0 %vm2753_vm0, %v2752_v0 }
  0x5a   : > { %2242 = vmatmul.mubr.msk.bf16.gmra.mrb[8].mxu0 %vm307_vm1, %v2455_v8 }
  0x5b   : > { %2245 = vmatprep.mubr.msk.bf16.mxu0 %vm2753_vm0, %v2752_v0 }
  0x62   : > { %2246 = vmatmul.mubr.msk.bf16.gmra.mrb[12].mxu0 %vm307_vm1, %v2456_v9 }
  0x63   : > { %2249 = vmatprep.mubr.msk.bf16.mxu0 %vm2753_vm0, %v2752_v0 }
  0x6a   : > { %2250 = vmatmul.mubr.msk.bf16.gmra.mrb[16].mxu0 %vm307_vm1, %v2457_v10 }
  0x6b   : > { %2253 = vmatprep.mubr.msk.bf16.mxu0 %vm2753_vm0, %v2752_v0 }
  0x72   : > { %2254 = vmatmul.mubr.msk.bf16.gmra.mrb[20].mxu0 %vm307_vm1, %v2458_v11 }
  0x73   : > { %2257 = vmatprep.mubr.msk.bf16.mxu0 %vm2753_vm0, %v2752_v0 }
  0x7a   : > { %2258 = vmatmul.mubr.msk.bf16.gmra.mrb[24].mxu0 %vm307_vm1, %v2459_v12 }
  0x7b   : > { %2321 = vmatprep.mubr.msk.bf16.mxu0 %vm2753_vm0, %v2752_v0 }
 0x11d   : > { %v363_v18 = vpop.f32.mrb[0].mxu0 }
 0x11e   : > { %v364_v19 = vadd.f32 %v363_v18, %v2918_v17  ;;  %v2235_v20 = vpop.f32.mrb[1].mxu0 }
 0x11f   : > { %v366_v21 = vpop.f32.mrb[2].mxu0 }
 0x120   : > { %v2079_v22 = vmul.f32 -1.442695, %v364_v19  ;;  %v367_v23 = vadd.f32 %v366_v21, %v2918_v17  ;;  %v2236_v24 = vpop.f32.mrb[3].mxu0 }
 0x122   : > { %2484 = vpow2.f32 %v2079_v22  ;;  %v2080_v25 = vmul.f32 -1.442695, %v367_v23 }
 0x124   : > { %2486 = vpow2.f32 %v2080_v25 }
 0x125   : > { %v371_v26 = vpop.f32.mrb[4].mxu0 }
 0x126   : > { %v2923_v27 = vadd.f32 %v371_v26, %v2918_v17  ;;  %v2239_v28 = vpop.f32.mrb[5].mxu0 }
 0x127   : > { %v374_v29 = vpop.f32.mrb[6].mxu0 }
 0x128   : > { %v2081_v30 = vmul.f32 -1.442695, %v2923_v27  ;;  %v2927_v31 = vadd.f32 %v374_v29, %v2918_v17  ;;  %v2240_v32 = vpop.f32.mrb[7].mxu0 }
 0x12a   : > { %2488 = vpow2.f32 %v2081_v30  ;;  %v2082_v33 = vmul.f32 -1.442695, %v2927_v31 }
 0x12c   : > { %v2485_v34 = vpop.eup %2484  ;;  %2490 = vpow2.f32 %v2082_v33 }
 0x12d   : > { %v460_v35 = vadd.f32 1.0, %v2485_v34  ;;  %v379_v36 = vpop.f32.mrb[8].mxu0 }
 0x12e   : > { %v2487_v37 = vpop.eup %2486  ;;  %v2931_v38 = vadd.f32 %v379_v36, %v2918_v17  ;;  %v2243_v39 = vpop.f32.mrb[9].mxu0 }
 0x12f   : > { %2492 = vrcp.f32 %v460_v35  ;;  %v461_v40 = vadd.f32 1.0, %v2487_v37  ;;  %v382_v41 = vpop.f32.mrb[10].mxu0 }
 0x130   : > { %v2083_v42 = vmul.f32 -1.442695, %v2931_v38  ;;  %v2935_v43 = vadd.f32 %v382_v41, %v2918_v17  ;;  %v2244_v44 = vpop.f32.mrb[11].mxu0 }
 0x131   : > { %2494 = vrcp.f32 %v461_v40 }
 0x132   : > { %2496 = vpow2.f32 %v2083_v42  ;;  %v2084_v45 = vmul.f32 -1.442695, %v2935_v43 }
 0x134   : > { %v2489_v46 = vpop.eup %2488  ;;  %2498 = vpow2.f32 %v2084_v45 }
 0x135   : > { %v462_v48 = vadd.f32 1.0, %v2489_v46  ;;  %v387_v49 = vpop.f32.mrb[12].mxu0 }
 0x136   : > { %v2491_v50 = vpop.eup %2490  ;;  %v2941_v51 = vadd.f32 %v387_v49, %v2918_v17  ;;  %v2247_v52 = vpop.f32.mrb[13].mxu0 }
 0x137   : > { %2500 = vrcp.f32 %v462_v48  ;;  %v463_v53 = vadd.f32 1.0, %v2491_v50  ;;  %v390_v54 = vpop.f32.mrb[14].mxu0 }
 0x138   : > { %v2085_v55 = vmul.f32 -1.442695, %v2941_v51  ;;  %v2945_v56 = vadd.f32 %v390_v54, %v2918_v17  ;;  %v2248_v57 = vpop.f32.mrb[15].mxu0 }
 0x139   : > { %v2493_v58 = vpop.eup %2492  ;;  %2502 = vrcp.f32 %v463_v53 }
 0x13a   : > { %v2948_v59 = vmul.f32 %v2493_v58, %v364_v19  ;;  %2504 = vpow2.f32 %v2085_v55  ;;  %v2086_v60 = vmul.f32 -1.442695, %v2945_v56 }
 0x13b   : > { %v2495_v61 = vpop.eup %2494 }
 0x13c   : > { %v2497_v62 = vpop.eup %2496  ;;  %v2951_v63 = vmul.f32 %v2495_v61, %v367_v23  ;;  %2506 = vpow2.f32 %v2086_v60  ;;  %v561_v1 = vsel %vm518_vm2, 0.0, %v2948_v59  ;;  %v519_v2 = vsel %vm518_vm2, %v2948_v59, 0.0 }
 0x13d   : > { %v464_v3 = vadd.f32 1.0, %v2497_v62  ;;  %v395_v4 = vpop.f32.mrb[16].mxu0  ;;  %575 = vadd.xlane.f32.xlu1 %v561_v1  ;;  %533 = vadd.xlane.f32.xlu0 %v519_v2 }
 0x13e   : > { %v2499_v5 = vpop.eup %2498  ;;  %v2960_v6 = vadd.f32 %v395_v4, %v2918_v17  ;;  %v2251_v7 = vpop.f32.mrb[17].mxu0  ;;  %v562_v13 = vsel %vm518_vm2, 0.0, %v2951_v63  ;;  %v520_v15 = vsel %vm518_vm2, %v2951_v63, 0.0 }
 0x13f   : > { %2508 = vrcp.f32 %v464_v3  ;;  %v465_v8 = vadd.f32 1.0, %v2499_v5  ;;  %v398_v9 = vpop.f32.mrb[18].mxu0 }
 0x140   : > { %v2087_v10 = vmul.f32 -1.442695, %v2960_v6  ;;  %v2964_v11 = vadd.f32 %v398_v9, %v2918_v17  ;;  %v2252_v12 = vpop.f32.mrb[19].mxu0 }
 0x141   : > { %v2501_v18 = vpop.eup %2500  ;;  %2510 = vrcp.f32 %v465_v8  ;;  %577 = vadd.xlane.f32.xlu1 %v562_v13  ;;  %535 = vadd.xlane.f32.xlu0 %v520_v15 }
 0x142   : > { %v2973_v19 = vmul.f32 %v2501_v18, %v2923_v27  ;;  %2512 = vpow2.f32 %v2087_v10  ;;  %v2088_v20 = vmul.f32 -1.442695, %v2964_v11 }
 0x143   : > { %v2503_v21 = vpop.eup %2502 }
 0x144   : > { %v2505_v22 = vpop.eup %2504  ;;  %v2977_v23 = vmul.f32 %v2503_v21, %v2927_v31  ;;  %2514 = vpow2.f32 %v2088_v20  ;;  %v521_v24 = vsel %vm518_vm2, %v2973_v19, 0.0  ;;  %v563_v36 = vsel %vm518_vm2, 0.0, %v2973_v19 }
 0x145   : > { %v466_v25 = vadd.f32 1.0, %v2505_v22  ;;  %v403_v26 = vpop.f32.mrb[20].mxu0  ;;  %537 = vadd.xlane.f32.xlu0 %v521_v24 }
 0x146   : > { %v2507_v28 = vpop.eup %2506  ;;  %v2983_v27 = vadd.f32 %v403_v26, %v2918_v17  ;;  %v2255_v29 = vpop.f32.mrb[21].mxu0  ;;  %v522_v30 = vsel %vm518_vm2, %v2977_v23, 0.0  ;;  %v564_v41 = vsel %vm518_vm2, 0.0, %v2977_v23 }
 0x147   : > { %2516 = vrcp.f32 %v466_v25  ;;  %v467_v31 = vadd.f32 1.0, %v2507_v28  ;;  %v406_v32 = vpop.f32.mrb[22].mxu0  ;;  %539 = vadd.xlane.f32.xlu1 %v522_v30 }
 0x148   : > { %v2089_v33 = vmul.f32 -1.442695, %v2983_v27  ;;  %v2990_v34 = vadd.f32 %v406_v32, %v2918_v17  ;;  %v2256_v35 = vpop.f32.mrb[23].mxu0 }
 0x149   : > { %v2509_v37 = vpop.eup %2508  ;;  %2518 = vrcp.f32 %v467_v31  ;;  %579 = vadd.xlane.f32.xlu0 %v563_v36 }
 0x14a   : > { %v2996_v39 = vmul.f32 %v2509_v37, %v2931_v38  ;;  %2520 = vpow2.f32 %v2089_v33  ;;  %v2090_v40 = vmul.f32 -1.442695, %v2990_v34 }
 0x14b   : > { %v2511_v42 = vpop.eup %2510  ;;  %581 = vadd.xlane.f32.xlu1 %v564_v41 }
 0x14c   : > { %v2513_v44 = vpop.eup %2512  ;;  %v3003_v45 = vmul.f32 %v2511_v42, %v2935_v43  ;;  %2522 = vpow2.f32 %v2090_v40  ;;  %v523_v46 = vsel %vm518_vm2, %v2996_v39, 0.0  ;;  %v565_v60 = vsel %vm518_vm2, 0.0, %v2996_v39 }
 0x14d   : > { %v468_v38 = vadd.f32 1.0, %v2513_v44  ;;  %v411_v48 = vpop.f32.mrb[24].mxu0  ;;  %541 = vadd.xlane.f32.xlu0 %v523_v46 }
 0x14e   : > { %v2515_v49 = vpop.eup %2514  ;;  %v3009_v50 = vadd.f32 %v411_v48, %v2918_v17  ;;  %v2259_v52 = vpop.f32.mrb[25].mxu0  ;;  %v524_v53 = vsel %vm518_vm2, %v3003_v45, 0.0  ;;  %v566_v2 = vsel %vm518_vm2, 0.0, %v3003_v45 }
 0x14f   : > { %2524 = vrcp.f32 %v468_v38  ;;  %v469_v43 = vadd.f32 1.0, %v2515_v49  ;;  %v414_v54 = vpop.f32.mrb[26].mxu0  ;;  %543 = vadd.xlane.f32.xlu1 %v524_v53 }
 0x150   : > { %v2091_v55 = vmul.f32 -1.442695, %v3009_v50  ;;  %v415_v57 = vadd.f32 %v414_v54, %v2918_v17  ;;  %v2260_v58 = vpop.f32.mrb[27].mxu0 }
 0x151   : > { %v2517_v61 = vpop.eup %2516  ;;  %2526 = vrcp.f32 %v469_v43  ;;  %583 = vadd.xlane.f32.xlu0 %v565_v60 }
 0x152   : > { %v3020_v62 = vmul.f32 %v2517_v61, %v2941_v51  ;;  %2528 = vpow2.f32 %v2091_v55  ;;  %v2092_v1 = vmul.f32 -1.442695, %v415_v57 }
 0x153   : > { %v2519_v3 = vpop.eup %2518  ;;  %585 = vadd.xlane.f32.xlu1 %v566_v2 }
 0x154   : > { %v2521_v17 = vpop.eup %2520  ;;  %v3026_v4 = vmul.f32 %v2519_v3, %v2945_v56  ;;  %2530 = vpow2.f32 %v2092_v1  ;;  %v525_v5 = vsel %vm518_vm2, %v3020_v62, 0.0  ;;  %v567_v56 = vsel %vm518_vm2, 0.0, %v3020_v62 }
 0x155   : > { %v470_v7 = vadd.f32 1.0, %v2521_v17  ;;  %545 = vadd.xlane.f32.xlu0 %v525_v5 }
 0x156   : > { %v2523_v51 = vpop.eup %2522  ;;  %v526_v8 = vsel %vm518_vm2, %v3026_v4, 0.0  ;;  %v568_v13 = vsel %vm518_vm2, 0.0, %v3026_v4 }
 0x157   : > { %2532 = vrcp.f32 %v470_v7  ;;  %v471_v9 = vadd.f32 1.0, %v2523_v51  ;;  %547 = vadd.xlane.f32.xlu1 %v526_v8 }
 0x159   : > { %v2525_v10 = vpop.eup %2524  ;;  %2534 = vrcp.f32 %v471_v9  ;;  %587 = vadd.xlane.f32.xlu0 %v567_v56 }
 0x15a   : > { %v3038_v12 = vmul.f32 %v2525_v10, %v2960_v6 }
 0x15b   : > { %v2527_v15 = vpop.eup %2526  ;;  %589 = vadd.xlane.f32.xlu1 %v568_v13 }
 0x15c   : > { %v2529_v18 = vpop.eup %2528  ;;  %v3044_v20 = vmul.f32 %v2527_v15, %v2964_v11  ;;  %v527_v21 = vsel %vm518_vm2, %v3038_v12, 0.0  ;;  %v569_v26 = vsel %vm518_vm2, 0.0, %v3038_v12 }
 0x15d   : > { %v472_v22 = vadd.f32 1.0, %v2529_v18  ;;  %549 = vadd.xlane.f32.xlu0 %v527_v21 }
 0x15e   : > { %v2531_v24 = vpop.eup %2530  ;;  %v528_v6 = vsel %vm518_vm2, %v3044_v20, 0.0  ;;  %v570_v29 = vsel %vm518_vm2, 0.0, %v3044_v20 }
 0x15f   : > { %2536 = vrcp.f32 %v472_v22  ;;  %v473_v25 = vadd.f32 1.0, %v2531_v24  ;;  %551 = vadd.xlane.f32.xlu1 %v528_v6 }
 0x161   : > { %v2533_v11 = vpop.eup %2532  ;;  %2538 = vrcp.f32 %v473_v25  ;;  %591 = vadd.xlane.f32.xlu0 %v569_v26 }
 0x162   : > { %v3056_v28 = vmul.f32 %v2533_v11, %v2983_v27 }
 0x163   : > { %v2535_v30 = vpop.eup %2534  ;;  %593 = vadd.xlane.f32.xlu1 %v570_v29 }
 0x164   : > { %v3062_v31 = vmul.f32 %v2535_v30, %v2990_v34  ;;  %v529_v32 = vsel %vm518_vm2, %v3056_v28, 0.0  ;;  %v571_v27 = vsel %vm518_vm2, 0.0, %v3056_v28 }
 0x165   : > { %553 = vadd.xlane.f32.xlu0 %v529_v32  ;;  %v2460_v32 = vld [vmem:[%s3939_s2] sm:$0xff]  }
 0x166   : > { %v530_v33 = vsel %vm518_vm2, %v3062_v31, 0.0  ;;  %v572_v34 = vsel %vm518_vm2, 0.0, %v3062_v31  ;;  %2262 = vmatpush3.bf16.msra.mxu1 %v2460_v32 }
 0x167   : > { %555 = vadd.xlane.f32.xlu1 %v530_v33  ;;  %2263 = vmatprep.subr.bf16.mxu1 %v2752_v0 }
 0x169   : > { %v2537_v35 = vpop.eup %2536  ;;  %595 = vadd.xlane.f32.xlu0 %v571_v27 }
 0x16a   : > { %v3074_v36 = vmul.f32 %v2537_v35, %v3009_v50 }
 0x16b   : > { %v2539_v37 = vpop.eup %2538  ;;  %597 = vadd.xlane.f32.xlu1 %v572_v34 }
 0x16c   : > { %v3079_v40 = vmul.f32 %v2539_v37, %v415_v57  ;;  %v531_v41 = vsel %vm518_vm2, %v3074_v36, 0.0  ;;  %v573_v44 = vsel %vm518_vm2, 0.0, %v3074_v36 }
 0x16d   : > { %557 = vadd.xlane.f32.xlu0 %v531_v41 }
 0x16e   : > { %v532_v42 = vsel %vm518_vm2, %v3079_v40, 0.0  ;;  %v574_v46 = vsel %vm518_vm2, 0.0, %v3079_v40 }
 0x16f   : > { %559 = vadd.xlane.f32.xlu1 %v532_v42 }
 0x171   : > { %599 = vadd.xlane.f32.xlu0 %v573_v44 }
 0x173   : > { %601 = vadd.xlane.f32.xlu1 %v574_v46 }
 0x1ca   : > { %v576_v38 = vpop.xlane.xlu1 %575  ;;  %v534_v48 = vpop.xlane.xlu0 %533 }
 0x1cb   : > { %v603_v49 = vsel %vm518_vm2, %v534_v48, %v576_v38  ;;  %v2461_v38 = vld [vmem:[%s3939_s2 + $0x8] sm:$0xff]  }
 0x1cc   : > { %v617_v50 = vmul.f32 0.015625, %v603_v49  ;;  %2264 = vmatpush3.bf16.msra.mxu1 %v2461_v38 }
 0x1cd   : > { %2265 = vmatprep.subr.bf16.mxu1 %v2752_v0 }
 0x1ce   : > { %v3096_v52 = vsub.f32 %v2948_v59, %v617_v50  ;;  %v578_v53 = vpop.xlane.xlu1 %577  ;;  %v536_v43 = vpop.xlane.xlu0 %535 }
 0x1cf   : > { %v604_v54 = vsel %vm518_vm2, %v536_v43, %v578_v53 }
 0x1d0   : > { %v618_v55 = vmul.f32 0.015625, %v604_v54  ;;  %v645_v57 = vmul.f32 %v3096_v52, %v3096_v52 }
 0x1d2   : > { %v3103_v58 = vsub.f32 %v2951_v63, %v618_v55  ;;  %v538_v60 = vpop.xlane.xlu0 %537  ;;  %v659_v61 = vsel %vm518_vm2, %v645_v57, 0.0  ;;  %v701_v17 = vsel %vm518_vm2, 0.0, %v645_v57  ;;  %v2462_v57 = vld [vmem:[%s3939_s2 + $0x10] sm:$0xff]  }
 0x1d3   : > { %673 = vadd.xlane.f32.xlu0 %v659_v61  ;;  %2266 = vmatpush3.bf16.msra.mxu1 %v2462_v57 }
 0x1d4   : > { %v540_v1 = vpop.xlane.xlu1 %539  ;;  %v646_v2 = vmul.f32 %v3103_v58, %v3103_v58  ;;  %2267 = vmatprep.subr.bf16.mxu1 %v2752_v0 }
 0x1d6   : > { %v580_v3 = vpop.xlane.xlu0 %579  ;;  %v660_v5 = vsel %vm518_vm2, %v646_v2, 0.0  ;;  %v702_v15 = vsel %vm518_vm2, 0.0, %v646_v2 }
 0x1d7   : > { %v605_v7 = vsel %vm518_vm2, %v538_v60, %v580_v3  ;;  %715 = vadd.xlane.f32.xlu0 %v701_v17  ;;  %675 = vadd.xlane.f32.xlu1 %v660_v5 }
 0x1d8   : > { %v619_v51 = vmul.f32 0.015625, %v605_v7  ;;  %v582_v8 = vpop.xlane.xlu1 %581 }
 0x1d9   : > { %v606_v9 = vsel %vm518_vm2, %v540_v1, %v582_v8  ;;  %v2463_v8 = vld [vmem:[%s3939_s2 + $0x18] sm:$0xff]  }
 0x1da   : > { %v3118_v56 = vsub.f32 %v2973_v19, %v619_v51  ;;  %v620_v10 = vmul.f32 0.015625, %v606_v9  ;;  %v542_v13 = vpop.xlane.xlu0 %541  ;;  %2268 = vmatpush3.bf16.msra.mxu1 %v2463_v8 }
 0x1db   : > { %717 = vadd.xlane.f32.xlu1 %v702_v15  ;;  %2269 = vmatprep.subr.bf16.mxu1 %v2752_v0 }
 0x1dc   : > { %v3123_v18 = vsub.f32 %v2977_v23, %v620_v10  ;;  %v544_v21 = vpop.xlane.xlu1 %543  ;;  %v647_v22 = vmul.f32 %v3118_v56, %v3118_v56 }
 0x1de   : > { %v584_v24 = vpop.xlane.xlu0 %583  ;;  %v661_v6 = vsel %vm518_vm2, %v647_v22, 0.0  ;;  %v648_v25 = vmul.f32 %v3123_v18, %v3123_v18  ;;  %v703_v37 = vsel %vm518_vm2, 0.0, %v647_v22 }
 0x1df   : > { %v607_v26 = vsel %vm518_vm2, %v542_v13, %v584_v24  ;;  %677 = vadd.xlane.f32.xlu0 %v661_v6  ;;  %v2464_v6 = vld [vmem:[%s3939_s2 + $0x20] sm:$0xff]  }
 0x1e0   : > { %v621_v11 = vmul.f32 0.015625, %v607_v26  ;;  %v586_v29 = vpop.xlane.xlu1 %585  ;;  %v662_v30 = vsel %vm518_vm2, %v648_v25, 0.0  ;;  %v704_v44 = vsel %vm518_vm2, 0.0, %v648_v25  ;;  %2270 = vmatpush3.bf16.msra.mxu1 %v2464_v6 }
 0x1e1   : > { %v608_v33 = vsel %vm518_vm2, %v544_v21, %v586_v29  ;;  %679 = vadd.xlane.f32.xlu1 %v662_v30  ;;  %2271 = vmatprep.subr.bf16.mxu1 %v2752_v0 }
 0x1e2   : > { %v3141_v27 = vsub.f32 %v2996_v39, %v621_v11  ;;  %v622_v35 = vmul.f32 0.015625, %v608_v33  ;;  %v546_v34 = vpop.xlane.xlu0 %545 }
 0x1e3   : > { %719 = vadd.xlane.f32.xlu0 %v703_v37  ;;  %v2465_v37 = vld [vmem:[%s3939_s2 + $0x28] sm:$0xff]  }
 0x1e4   : > { %v3147_v41 = vsub.f32 %v3003_v45, %v622_v35  ;;  %v548_v42 = vpop.xlane.xlu1 %547  ;;  %v649_v46 = vmul.f32 %v3141_v27, %v3141_v27  ;;  %2272 = vmatpush3.bf16.msra.mxu1 %v2465_v37 }
 0x1e5   : > { %721 = vadd.xlane.f32.xlu1 %v704_v44  ;;  %2273 = vmatprep.subr.bf16.mxu1 %v2752_v0 }
 0x1e6   : > { %v588_v48 = vpop.xlane.xlu0 %587  ;;  %v663_v49 = vsel %vm518_vm2, %v649_v46, 0.0  ;;  %v650_v50 = vmul.f32 %v3147_v41, %v3147_v41  ;;  %v705_v3 = vsel %vm518_vm2, 0.0, %v649_v46 }
 0x1e7   : > { %v609_v53 = vsel %vm518_vm2, %v546_v34, %v588_v48  ;;  %681 = vadd.xlane.f32.xlu0 %v663_v49 }
 0x1e8   : > { %v623_v43 = vmul.f32 0.015625, %v609_v53  ;;  %v590_v54 = vpop.xlane.xlu1 %589  ;;  %v664_v55 = vsel %vm518_vm2, %v650_v50, 0.0  ;;  %v706_v7 = vsel %vm518_vm2, 0.0, %v650_v50  ;;  %v2466_v53 = vld [vmem:[%s3939_s2 + $0x30] sm:$0xff]  }
 0x1e9   : > { %v610_v60 = vsel %vm518_vm2, %v548_v42, %v590_v54  ;;  %683 = vadd.xlane.f32.xlu1 %v664_v55  ;;  %2274 = vmatpush3.bf16.msra.mxu1 %v2466_v53 }
 0x1ea   : > { %v3171_v61 = vsub.f32 %v3020_v62, %v623_v43  ;;  %v624_v1 = vmul.f32 0.015625, %v610_v60  ;;  %v550_v2 = vpop.xlane.xlu0 %549  ;;  %2275 = vmatprep.subr.bf16.mxu1 %v2752_v0 }
 0x1eb   : > { %723 = vadd.xlane.f32.xlu0 %v705_v3 }
 0x1ec   : > { %v3177_v17 = vsub.f32 %v3026_v4, %v624_v1  ;;  %v552_v5 = vpop.xlane.xlu1 %551  ;;  %v651_v51 = vmul.f32 %v3171_v61, %v3171_v61 }
 0x1ed   : > { %725 = vadd.xlane.f32.xlu1 %v706_v7  ;;  %v2467_v7 = vld [vmem:[%s3939_s2 + $0x38] sm:$0xff]  }
 0x1ee   : > { %v592_v9 = vpop.xlane.xlu0 %591  ;;  %v665_v10 = vsel %vm518_vm2, %v651_v51, 0.0  ;;  %v652_v13 = vmul.f32 %v3177_v17, %v3177_v17  ;;  %v707_v30 = vsel %vm518_vm2, 0.0, %v651_v51  ;;  %2276 = vmatpush3.bf16.msra.mxu1 %v2467_v7 }
 0x1ef   : > { %v611_v15 = vsel %vm518_vm2, %v550_v2, %v592_v9  ;;  %685 = vadd.xlane.f32.xlu0 %v665_v10  ;;  %2349 = vmatprep.subr.bf16.mxu1 %v2752_v0 }
 0x1f0   : > { %v625_v21 = vmul.f32 0.015625, %v611_v15  ;;  %v594_v22 = vpop.xlane.xlu1 %593  ;;  %v666_v24 = vsel %vm518_vm2, %v652_v13, 0.0  ;;  %v708_v35 = vsel %vm518_vm2, 0.0, %v652_v13 }
 0x1f1   : > { %v612_v25 = vsel %vm518_vm2, %v552_v5, %v594_v22  ;;  %687 = vadd.xlane.f32.xlu1 %v666_v24 }
 0x1f2   : > { %v3201_v26 = vsub.f32 %v3038_v12, %v625_v21  ;;  %v626_v11 = vmul.f32 0.015625, %v612_v25  ;;  %v554_v29 = vpop.xlane.xlu0 %553 }
 0x1f3   : > { %727 = vadd.xlane.f32.xlu0 %v707_v30 }
 0x1f4   : > { %v3207_v32 = vsub.f32 %v3044_v20, %v626_v11  ;;  %v556_v33 = vpop.xlane.xlu1 %555  ;;  %v653_v34 = vmul.f32 %v3201_v26, %v3201_v26 }
 0x1f5   : > { %729 = vadd.xlane.f32.xlu1 %v708_v35 }
 0x1f6   : > { %v596_v42 = vpop.xlane.xlu0 %595  ;;  %v667_v44 = vsel %vm518_vm2, %v653_v34, 0.0  ;;  %v654_v46 = vmul.f32 %v3207_v32, %v3207_v32  ;;  %v709_v60 = vsel %vm518_vm2, 0.0, %v653_v34 }
 0x1f7   : > { %v613_v38 = vsel %vm518_vm2, %v554_v29, %v596_v42  ;;  %689 = vadd.xlane.f32.xlu0 %v667_v44  ;;  %v2468_v44 = vld [vmem:[%s3939_s2 + $0x40] sm:$0xff]  }
 0x1f8   : > { %v627_v48 = vmul.f32 0.015625, %v613_v38  ;;  %v598_v49 = vpop.xlane.xlu1 %597  ;;  %v668_v50 = vsel %vm518_vm2, %v654_v46, 0.0  ;;  %v710_v3 = vsel %vm518_vm2, 0.0, %v654_v46  ;;  %2306 = vmatpush3.bf16.msra.mxu0 %v2468_v44  ;;  %v2469_v46 = vld [vmem:[%s3939_s2 + $0x48] sm:$0xff]   ;;  %v2470_v38 = vld [vmem:[%s3939_s2 + $0x50] sm:$0xff]  }
 0x1f9   : > { %v614_v43 = vsel %vm518_vm2, %v556_v33, %v598_v49  ;;  %691 = vadd.xlane.f32.xlu1 %v668_v50  ;;  %2307 = vmatprep.subr.bf16.mxu0 %v2752_v0 }
 0x1fa   : > { %v3231_v54 = vsub.f32 %v3056_v28, %v627_v48  ;;  %v628_v55 = vmul.f32 0.015625, %v614_v43  ;;  %v558_v57 = vpop.xlane.xlu0 %557 }
 0x1fb   : > { %731 = vadd.xlane.f32.xlu0 %v709_v60 }
 0x1fc   : > { %v3237_v1 = vsub.f32 %v3062_v31, %v628_v55  ;;  %v560_v2 = vpop.xlane.xlu1 %559  ;;  %v655_v5 = vmul.f32 %v3231_v54, %v3231_v54  ;;  %2308 = vmatpush3.bf16.msra.mxu0 %v2469_v46 }
 0x1fd   : > { %733 = vadd.xlane.f32.xlu1 %v710_v3  ;;  %2309 = vmatprep.subr.bf16.mxu0 %v2752_v0 }
 0x1fe   : > { %v600_v51 = vpop.xlane.xlu0 %599  ;;  %v669_v8 = vsel %vm518_vm2, %v655_v5, 0.0  ;;  %v656_v9 = vmul.f32 %v3237_v1, %v3237_v1  ;;  %v711_v25 = vsel %vm518_vm2, 0.0, %v655_v5 }
 0x1ff   : > { %v615_v10 = vsel %vm518_vm2, %v558_v57, %v600_v51  ;;  %693 = vadd.xlane.f32.xlu0 %v669_v8 }
 0x200   : > { %v629_v13 = vmul.f32 0.015625, %v615_v10  ;;  %v602_v15 = vpop.xlane.xlu1 %601  ;;  %v670_v21 = vsel %vm518_vm2, %v656_v9, 0.0  ;;  %v712_v29 = vsel %vm518_vm2, 0.0, %v656_v9  ;;  %2310 = vmatpush3.bf16.msra.mxu0 %v2470_v38  ;;  %v815_v9 = vsub.s32 1, %v2909_v14 }
 0x201   : > { %v616_v22 = vsel %vm518_vm2, %v560_v2, %v602_v15  ;;  %695 = vadd.xlane.f32.xlu1 %v670_v21  ;;  %2311 = vmatprep.subr.bf16.mxu0 %v2752_v0 }
 0x202   : > { %v3258_v24 = vsub.f32 %v3074_v36, %v629_v13  ;;  %v630_v6 = vmul.f32 0.015625, %v616_v22 }
 0x203   : > { %735 = vadd.xlane.f32.xlu0 %v711_v25 }
 0x204   : > { %v3263_v11 = vsub.f32 %v3079_v40, %v630_v6  ;;  %v657_v30 = vmul.f32 %v3258_v24, %v3258_v24 }
 0x205   : > { %737 = vadd.xlane.f32.xlu1 %v712_v29 }
 0x206   : > { %v671_v33 = vsel %vm518_vm2, %v657_v30, 0.0  ;;  %v658_v35 = vmul.f32 %v3263_v11, %v3263_v11  ;;  %v713_v37 = vsel %vm518_vm2, 0.0, %v657_v30  ;;  %v3302_v30 = vrot.slane %v2915_v16, %v815_v9 }
 0x207   : > { %697 = vadd.xlane.f32.xlu0 %v671_v33  ;;  %v833_v33 = vsub.s32 2, %v2909_v14 }
 0x208   : > { %v672_v34 = vsel %vm518_vm2, %v658_v35, 0.0  ;;  %v714_v42 = vsel %vm518_vm2, 0.0, %v658_v35 }
 0x209   : > { %699 = vadd.xlane.f32.xlu1 %v672_v34 }
 0x20b   : > { %739 = vadd.xlane.f32.xlu0 %v713_v37 }
 0x20d   : > { %741 = vadd.xlane.f32.xlu1 %v714_v42 }
 0x260   : > { %v674_v48 = vpop.xlane.xlu0 %673 }
 0x264   : > { %v676_v49 = vpop.xlane.xlu1 %675  ;;  %v716_v50 = vpop.xlane.xlu0 %715 }
 0x265   : > { %v743_v53 = vsel %vm518_vm2, %v674_v48, %v716_v50 }
 0x266   : > { %v757_v43 = vmul.f32 0.015625, %v743_v53 }
 0x268   : > { %v771_v55 = vadd.f32 1e-05, %v757_v43  ;;  %v718_v57 = vpop.xlane.xlu1 %717 }
 0x269   : > { %v744_v60 = vsel %vm518_vm2, %v676_v49, %v718_v57 }
 0x26a   : > { %2540 = vrsqrt.f32 %v771_v55  ;;  %v758_v2 = vmul.f32 0.015625, %v744_v60 }
 0x26c   : > { %v772_v3 = vadd.f32 1e-05, %v758_v2  ;;  %v678_v5 = vpop.xlane.xlu0 %677 }
 0x26e   : > { %2542 = vrsqrt.f32 %v772_v3  ;;  %v680_v7 = vpop.xlane.xlu1 %679 }
 0x270   : > { %v720_v51 = vpop.xlane.xlu0 %719 }
 0x271   : > { %v745_v8 = vsel %vm518_vm2, %v678_v5, %v720_v51 }
 0x272   : > { %v759_v10 = vmul.f32 0.015625, %v745_v8  ;;  %v722_v13 = vpop.xlane.xlu1 %721 }
 0x273   : > { %v746_v15 = vsel %vm518_vm2, %v680_v7, %v722_v13 }
 0x274   : > { %v2541_v21 = vpop.eup %2540  ;;  %v773_v22 = vadd.f32 1e-05, %v759_v10  ;;  %v760_v6 = vmul.f32 0.015625, %v746_v15  ;;  %v682_v25 = vpop.xlane.xlu0 %681 }
 0x275   : > { %v799_v29 = vmul.f32 %v2541_v21, %v3096_v52  ;;  %v3310_v52 = vrot.slane %v2915_v16, %v833_v33 }
 0x276   : > { %2544 = vrsqrt.f32 %v773_v22  ;;  %v774_v35 = vadd.f32 1e-05, %v760_v6  ;;  %v684_v34 = vpop.xlane.xlu1 %683 }
 0x277   : > { %v817_v38 = vmul.f32 %v3302_v30, %v799_v29 }
 0x278   : > { %v2543_v37 = vpop.eup %2542  ;;  %2546 = vrsqrt.f32 %v774_v35  ;;  %v724_v42 = vpop.xlane.xlu0 %723 }
 0x279   : > { %v747_v44 = vsel %vm518_vm2, %v682_v25, %v724_v42  ;;  %v800_v46 = vmul.f32 %v2543_v37, %v3103_v58  ;;  %v835_v60 = vadd.f32 %v3310_v52, %v817_v38 }
 0x27a   : > { %v761_v48 = vmul.f32 0.015625, %v747_v44  ;;  %v726_v49 = vpop.xlane.xlu1 %725 }
 0x27b   : > { %v748_v50 = vsel %vm518_vm2, %v684_v34, %v726_v49  ;;  %v818_v53 = vmul.f32 %v3302_v30, %v800_v46 }
 0x27c   : > { %v775_v43 = vadd.f32 1e-05, %v761_v48  ;;  %v762_v55 = vmul.f32 0.015625, %v748_v50  ;;  %v686_v57 = vpop.xlane.xlu0 %685 }
 0x27d   : > { %v836_v2 = vadd.f32 %v3310_v52, %v818_v53 }
 0x27e   : > { %2548 = vrsqrt.f32 %v775_v43  ;;  %v776_v58 = vadd.f32 1e-05, %v762_v55  ;;  %v688_v3 = vpop.xlane.xlu1 %687 }
 0x27f   : > { %v865_v5 = vpack.c.bf16 %v836_v2, %v835_v60 }
 0x280   : > { %v2545_v16 = vpop.eup %2544  ;;  %2550 = vrsqrt.f32 %v776_v58  ;;  %v728_v7 = vpop.xlane.xlu0 %727 }
 0x281   : > { %v749_v51 = vsel %vm518_vm2, %v686_v57, %v728_v7  ;;  %2278 = vmatmul.mubr.bf16.vlgmr.msra.gmra.mrb[0].mxu1 %v865_v5  ;;  %v801_v8 = vmul.f32 %v2545_v16, %v3118_v56 }
 0x282   : > { %v2547_v9 = vpop.eup %2546  ;;  %v763_v10 = vmul.f32 0.015625, %v749_v51  ;;  %v730_v13 = vpop.xlane.xlu1 %729  ;;  %2281 = vmatprep.mubr.msk.bf16.mxu1 %vm2753_vm0, %v2752_v0 }
 0x283   : > { %v750_v15 = vsel %vm518_vm2, %v688_v3, %v730_v13  ;;  %v802_v21 = vmul.f32 %v2547_v9, %v3123_v18  ;;  %v819_v22 = vmul.f32 %v3302_v30, %v801_v8 }
 0x284   : > { %v777_v6 = vadd.f32 1e-05, %v763_v10  ;;  %v764_v25 = vmul.f32 0.015625, %v750_v15  ;;  %v690_v29 = vpop.xlane.xlu0 %689 }
 0x285   : > { %v820_v33 = vmul.f32 %v3302_v30, %v802_v21  ;;  %v837_v34 = vadd.f32 %v3310_v52, %v819_v22 }
 0x286   : > { %2552 = vrsqrt.f32 %v777_v6  ;;  %v778_v56 = vadd.f32 1e-05, %v764_v25  ;;  %v692_v35 = vpop.xlane.xlu1 %691 }
 0x287   : > { %v838_v37 = vadd.f32 %v3310_v52, %v820_v33 }
 0x288   : > { %v2549_v42 = vpop.eup %2548  ;;  %2554 = vrsqrt.f32 %v778_v56  ;;  %v732_v44 = vpop.xlane.xlu0 %731 }
 0x289   : > { %v751_v18 = vsel %vm518_vm2, %v690_v29, %v732_v44  ;;  %v866_v46 = vpack.c.bf16 %v838_v37, %v837_v34  ;;  %v803_v38 = vmul.f32 %v2549_v42, %v3141_v27 }
 0x28a   : > { %v2551_v48 = vpop.eup %2550  ;;  %v765_v49 = vmul.f32 0.015625, %v751_v18  ;;  %v734_v50 = vpop.xlane.xlu1 %733 }
 0x28b   : > { %v752_v53 = vsel %vm518_vm2, %v692_v35, %v734_v50  ;;  %2282 = vmatmul.mubr.bf16.gmra.mrb[4].mxu1 %v866_v46  ;;  %v804_v43 = vmul.f32 %v2551_v48, %v3147_v41  ;;  %v821_v55 = vmul.f32 %v3302_v30, %v803_v38 }
 0x28c   : > { %v779_v57 = vadd.f32 1e-05, %v765_v49  ;;  %v766_v60 = vmul.f32 0.015625, %v752_v53  ;;  %v694_v2 = vpop.xlane.xlu0 %693  ;;  %2285 = vmatprep.mubr.msk.bf16.mxu1 %vm2753_vm0, %v2752_v0 }
 0x28d   : > { %v822_v58 = vmul.f32 %v3302_v30, %v804_v43  ;;  %v839_v5 = vadd.f32 %v3310_v52, %v821_v55 }
 0x28e   : > { %2556 = vrsqrt.f32 %v779_v57  ;;  %v780_v27 = vadd.f32 1e-05, %v766_v60  ;;  %v696_v3 = vpop.xlane.xlu1 %695 }
 0x28f   : > { %v840_v16 = vadd.f32 %v3310_v52, %v822_v58 }
 0x290   : > { %v2553_v7 = vpop.eup %2552  ;;  %2558 = vrsqrt.f32 %v780_v27  ;;  %v736_v41 = vpop.xlane.xlu0 %735 }
 0x291   : > { %v753_v51 = vsel %vm518_vm2, %v694_v2, %v736_v41  ;;  %v867_v8 = vpack.c.bf16 %v840_v16, %v839_v5  ;;  %v805_v9 = vmul.f32 %v2553_v7, %v3171_v61 }
 0x292   : > { %v2555_v10 = vpop.eup %2554  ;;  %v767_v13 = vmul.f32 0.015625, %v753_v51  ;;  %v738_v15 = vpop.xlane.xlu1 %737 }
 0x293   : > { %v754_v21 = vsel %vm518_vm2, %v696_v3, %v738_v15  ;;  %2286 = vmatmul.mubr.bf16.gmra.mrb[8].mxu1 %v867_v8  ;;  %v806_v22 = vmul.f32 %v2555_v10, %v3177_v17  ;;  %v823_v6 = vmul.f32 %v3302_v30, %v805_v9 }
 0x294   : > { %v781_v25 = vadd.f32 1e-05, %v767_v13  ;;  %v768_v29 = vmul.f32 0.015625, %v754_v21  ;;  %v698_v33 = vpop.xlane.xlu0 %697  ;;  %2289 = vmatprep.mubr.msk.bf16.mxu1 %vm2753_vm0, %v2752_v0 }
 0x295   : > { %v824_v56 = vmul.f32 %v3302_v30, %v806_v22  ;;  %v841_v34 = vadd.f32 %v3310_v52, %v823_v6 }
 0x296   : > { %2560 = vrsqrt.f32 %v781_v25  ;;  %v782_v61 = vadd.f32 1e-05, %v768_v29  ;;  %v700_v35 = vpop.xlane.xlu1 %699  ;;  %v2475_v29 = vld [vmem:[%s3939_s2 + $0x78] sm:$0xff]  }
 0x297   : > { %v842_v37 = vadd.f32 %v3310_v52, %v824_v56 }
 0x298   : > { %v2557_v42 = vpop.eup %2556  ;;  %2562 = vrsqrt.f32 %v782_v61  ;;  %v740_v17 = vpop.xlane.xlu0 %739 }
 0x299   : > { %v755_v44 = vsel %vm518_vm2, %v698_v33, %v740_v17  ;;  %v868_v18 = vpack.c.bf16 %v842_v37, %v841_v34  ;;  %v807_v46 = vmul.f32 %v2557_v42, %v3201_v26 }
 0x29a   : > { %v2559_v38 = vpop.eup %2558  ;;  %v769_v48 = vmul.f32 0.015625, %v755_v44  ;;  %v742_v49 = vpop.xlane.xlu1 %741 }
 0x29b   : > { %v756_v50 = vsel %vm518_vm2, %v700_v35, %v742_v49  ;;  %2290 = vmatmul.mubr.bf16.gmra.mrb[12].mxu1 %v868_v18  ;;  %v808_v53 = vmul.f32 %v2559_v38, %v3207_v32  ;;  %v825_v43 = vmul.f32 %v3302_v30, %v807_v46 }
 0x29c   : > { %v783_v55 = vadd.f32 1e-05, %v769_v48  ;;  %v770_v57 = vmul.f32 0.015625, %v756_v50  ;;  %2293 = vmatprep.mubr.msk.bf16.mxu1 %vm2753_vm0, %v2752_v0 }
 0x29d   : > { %v826_v60 = vmul.f32 %v3302_v30, %v808_v53  ;;  %v843_v2 = vadd.f32 %v3310_v52, %v825_v43 }
 0x29e   : > { %2564 = vrsqrt.f32 %v783_v55  ;;  %v784_v26 = vadd.f32 1e-05, %v770_v57 }
 0x29f   : > { %v844_v58 = vadd.f32 %v3310_v52, %v826_v60 }
 0x2a0   : > { %v2561_v27 = vpop.eup %2560  ;;  %2566 = vrsqrt.f32 %v784_v26 }
 0x2a1   : > { %v869_v3 = vpack.c.bf16 %v844_v58, %v843_v2  ;;  %v809_v32 = vmul.f32 %v2561_v27, %v3231_v54 }
 0x2a2   : > { %v2563_v5 = vpop.eup %2562 }
 0x2a3   : > { %2294 = vmatmul.mubr.bf16.gmra.mrb[16].mxu1 %v869_v3  ;;  %v810_v16 = vmul.f32 %v2563_v5, %v3237_v1  ;;  %v827_v7 = vmul.f32 %v3302_v30, %v809_v32 }
 0x2a4   : > { %2297 = vmatprep.mubr.msk.bf16.mxu1 %vm2753_vm0, %v2752_v0 }
 0x2a5   : > { %v828_v41 = vmul.f32 %v3302_v30, %v810_v16  ;;  %v845_v51 = vadd.f32 %v3310_v52, %v827_v7 }
 0x2a7   : > { %v846_v8 = vadd.f32 %v3310_v52, %v828_v41 }
 0x2a8   : > { %v2565_v9 = vpop.eup %2564 }
 0x2a9   : > { %v870_v10 = vpack.c.bf16 %v846_v8, %v845_v51  ;;  %v811_v13 = vmul.f32 %v2565_v9, %v3258_v24  ;;  %v2471_v24 = vld [vmem:[%s3939_s2 + $0x58] sm:$0xff]  }
 0x2aa   : > { %v2567_v54 = vpop.eup %2566  ;;  %2312 = vmatpush3.bf16.msra.mxu0 %v2471_v24 }
 0x2ab   : > { %2298 = vmatmul.mubr.bf16.gmra.mrb[20].mxu1 %v870_v10  ;;  %v812_v15 = vmul.f32 %v2567_v54, %v3263_v11  ;;  %v829_v1 = vmul.f32 %v3302_v30, %v811_v13  ;;  %2313 = vmatprep.subr.bf16.mxu0 %v2752_v0  ;;  %v2472_v11 = vld [vmem:[%s3939_s2 + $0x60] sm:$0xff]  }
 0x2ac   : > { %2301 = vmatprep.mubr.msk.bf16.mxu1 %vm2753_vm0, %v2752_v0 }
 0x2ad   : > { %v830_v21 = vmul.f32 %v3302_v30, %v812_v15  ;;  %v847_v22 = vadd.f32 %v3310_v52, %v829_v1  ;;  %v2473_v30 = vld [vmem:[%s3939_s2 + $0x68] sm:$0xff]  }
 0x2ae   : > { %2314 = vmatpush3.bf16.msra.mxu0 %v2472_v11 }
 0x2af   : > { %v848_v6 = vadd.f32 %v3310_v52, %v830_v21  ;;  %2315 = vmatprep.subr.bf16.mxu0 %v2752_v0  ;;  %v2474_v52 = vld [vmem:[%s3939_s2 + $0x70] sm:$0xff]  }
 0x2b1   : > { %v871_v25 = vpack.c.bf16 %v848_v6, %v847_v22 }
 0x2b2   : > { %2316 = vmatpush3.bf16.msra.mxu0 %v2473_v30 }
 0x2b3   : > { %2302 = vmatmul.mubr.bf16.gmra.mrb[24].mxu1 %v871_v25  ;;  %2317 = vmatprep.subr.bf16.mxu0 %v2752_v0 }
 0x2b4   : > { %2365 = vmatprep.mubr.msk.bf16.mxu1 %vm2753_vm0, %v2752_v0 }
 0x2b6   : > { %2318 = vmatpush3.bf16.msra.mxu0 %v2474_v52 }
 0x2b7   : > { %2319 = vmatprep.subr.bf16.mxu0 %v2752_v0 }
 0x2ba   : > { %2320 = vmatpush3.bf16.msra.mxu0 %v2475_v29 }
 0x354   : > { %v954_v33 = vpop.f32.mrb[0].mxu1 }
 0x355   : > { %v2101_v56 = vmul.f32 -1.442695, %v954_v33  ;;  %v2279_v61 = vpop.f32.mrb[1].mxu1 }
 0x356   : > { %v957_v35 = vpop.f32.mrb[2].mxu1 }
 0x357   : > { %2568 = vpow2.f32 %v2101_v56  ;;  %v2102_v34 = vmul.f32 -1.442695, %v957_v35  ;;  %v2280_v37 = vpop.f32.mrb[3].mxu1 }
 0x359   : > { %2570 = vpow2.f32 %v2102_v34 }
 0x35e   : > { %v962_v42 = vpop.f32.mrb[4].mxu1 }
 0x35f   : > { %v2103_v17 = vmul.f32 -1.442695, %v962_v42  ;;  %v2283_v44 = vpop.f32.mrb[5].mxu1 }
 0x360   : > { %v965_v18 = vpop.f32.mrb[6].mxu1 }
 0x361   : > { %v2569_v46 = vpop.eup %2568  ;;  %2572 = vpow2.f32 %v2103_v17  ;;  %v2104_v38 = vmul.f32 -1.442695, %v965_v18  ;;  %v2284_v48 = vpop.f32.mrb[7].mxu1 }
 0x362   : > { %v1051_v49 = vadd.f32 1.0, %v2569_v46 }
 0x363   : > { %v2571_v50 = vpop.eup %2570  ;;  %2574 = vpow2.f32 %v2104_v38 }
 0x364   : > { %2576 = vrcp.f32 %v1051_v49  ;;  %v1052_v53 = vadd.f32 1.0, %v2571_v50 }
 0x366   : > { %2578 = vrcp.f32 %v1052_v53  ;;  %v3402_v43 = vpop.f32.mrb[8].mxu1 }
 0x367   : > { %v2105_v55 = vmul.f32 -1.442695, %v3402_v43  ;;  %v2287_v57 = vpop.f32.mrb[9].mxu1 }
 0x368   : > { %v3405_v60 = vpop.f32.mrb[10].mxu1 }
 0x369   : > { %2580 = vpow2.f32 %v2105_v55  ;;  %v2106_v26 = vmul.f32 -1.442695, %v3405_v60  ;;  %v2288_v2 = vpop.f32.mrb[11].mxu1 }
 0x36b   : > { %v2573_v58 = vpop.eup %2572  ;;  %2582 = vpow2.f32 %v2106_v26 }
 0x36c   : > { %v1053_v27 = vadd.f32 1.0, %v2573_v58 }
 0x36d   : > { %v2575_v3 = vpop.eup %2574 }
 0x36e   : > { %v2577_v32 = vpop.eup %2576  ;;  %2584 = vrcp.f32 %v1053_v27  ;;  %v1054_v5 = vadd.f32 1.0, %v2575_v3  ;;  %v3408_v16 = vpop.f32.mrb[12].mxu1 }
 0x36f   : > { %v2107_v7 = vmul.f32 -1.442695, %v3408_v16  ;;  %v2291_v41 = vpop.f32.mrb[13].mxu1  ;;  %v1093_v9 = vmul.f32 %v2577_v32, %v954_v33 }
 0x370   : > { %v2579_v51 = vpop.eup %2578  ;;  %2586 = vrcp.f32 %v1054_v5  ;;  %v3411_v8 = vpop.f32.mrb[14].mxu1 }
 0x371   : > { %v1094_v10 = vmul.f32 %v2579_v51, %v957_v35  ;;  %2588 = vpow2.f32 %v2107_v7  ;;  %v2108_v13 = vmul.f32 -1.442695, %v3411_v8  ;;  %v2292_v54 = vpop.f32.mrb[15].mxu1 }
 0x373   : > { %v2581_v15 = vpop.eup %2580  ;;  %v1124_v1 = vpack.c.bf16 %v1094_v10, %v1093_v9  ;;  %2590 = vpow2.f32 %v2108_v13 }
 0x374   : > { %v1055_v21 = vadd.f32 1.0, %v2581_v15 }
 0x375   : > { %v2583_v22 = vpop.eup %2582  ;;  %2322 = vmatmul.mubr.bf16.vlgmr.msra.gmra.mrb[28].mxu0 %v1124_v1 }
 0x376   : > { %2592 = vrcp.f32 %v1055_v21  ;;  %v1056_v6 = vadd.f32 1.0, %v2583_v22  ;;  %v3414_v25 = vpop.f32.mrb[16].mxu1  ;;  %2325 = vmatprep.mubr.msk.bf16.mxu0 %vm2753_vm0, %v2752_v0 }
 0x377   : > { %v2109_v24 = vmul.f32 -1.442695, %v3414_v25  ;;  %v2295_v11 = vpop.f32.mrb[17].mxu1 }
 0x378   : > { %v2585_v30 = vpop.eup %2584  ;;  %2594 = vrcp.f32 %v1056_v6  ;;  %v3419_v52 = vpop.f32.mrb[18].mxu1 }
 0x379   : > { %2596 = vpow2.f32 %v2109_v24  ;;  %v2110_v29 = vmul.f32 -1.442695, %v3419_v52  ;;  %v2296_v33 = vpop.f32.mrb[19].mxu1  ;;  %v1095_v35 = vmul.f32 %v2585_v30, %v962_v42 }
 0x37a   : > { %v2587_v56 = vpop.eup %2586 }
 0x37b   : > { %v2589_v61 = vpop.eup %2588  ;;  %v1096_v34 = vmul.f32 %v2587_v56, %v965_v18  ;;  %2598 = vpow2.f32 %v2110_v29 }
 0x37c   : > { %v1057_v37 = vadd.f32 1.0, %v2589_v61 }
 0x37d   : > { %v2591_v17 = vpop.eup %2590  ;;  %v1125_v44 = vpack.c.bf16 %v1096_v34, %v1095_v35 }
 0x37e   : > { %2600 = vrcp.f32 %v1057_v37  ;;  %v1058_v46 = vadd.f32 1.0, %v2591_v17  ;;  %v994_v38 = vpop.f32.mrb[20].mxu1 }
 0x37f   : > { %v2111_v48 = vmul.f32 -1.442695, %v994_v38  ;;  %v2299_v49 = vpop.f32.mrb[21].mxu1  ;;  %2326 = vmatmul.mubr.bf16.gmra.mrb[32].mxu0 %v1125_v44 }
 0x380   : > { %v2593_v50 = vpop.eup %2592  ;;  %2602 = vrcp.f32 %v1058_v46  ;;  %v997_v53 = vpop.f32.mrb[22].mxu1  ;;  %2329 = vmatprep.mubr.msk.bf16.mxu0 %vm2753_vm0, %v2752_v0 }
 0x381   : > { %2604 = vpow2.f32 %v2111_v48  ;;  %v2112_v55 = vmul.f32 -1.442695, %v997_v53  ;;  %v2300_v42 = vpop.f32.mrb[23].mxu1  ;;  %v1097_v26 = vmul.f32 %v2593_v50, %v3402_v43 }
 0x382   : > { %v2595_v18 = vpop.eup %2594 }
 0x383   : > { %v2597_v57 = vpop.eup %2596  ;;  %v1098_v2 = vmul.f32 %v2595_v18, %v3405_v60  ;;  %2606 = vpow2.f32 %v2112_v55 }
 0x384   : > { %v1059_v58 = vadd.f32 1.0, %v2597_v57 }
 0x385   : > { %v2599_v27 = vpop.eup %2598  ;;  %v1126_v3 = vpack.c.bf16 %v1098_v2, %v1097_v26 }
 0x386   : > { %2608 = vrcp.f32 %v1059_v58  ;;  %v1060_v32 = vadd.f32 1.0, %v2599_v27  ;;  %v1002_v5 = vpop.f32.mrb[24].mxu1 }
 0x387   : > { %v2113_v7 = vmul.f32 -1.442695, %v1002_v5  ;;  %v2303_v41 = vpop.f32.mrb[25].mxu1  ;;  %2330 = vmatmul.mubr.bf16.gmra.mrb[36].mxu0 %v1126_v3 }
 0x388   : > { %v2601_v51 = vpop.eup %2600  ;;  %2610 = vrcp.f32 %v1060_v32  ;;  %v1005_v9 = vpop.f32.mrb[26].mxu1  ;;  %2333 = vmatprep.mubr.msk.bf16.mxu0 %vm2753_vm0, %v2752_v0 }
 0x389   : > { %2612 = vpow2.f32 %v2113_v7  ;;  %v2114_v43 = vmul.f32 -1.442695, %v1005_v9  ;;  %v2304_v10 = vpop.f32.mrb[27].mxu1  ;;  %v1099_v54 = vmul.f32 %v2601_v51, %v3408_v16 }
 0x38a   : > { %v2603_v60 = vpop.eup %2602 }
 0x38b   : > { %v2605_v13 = vpop.eup %2604  ;;  %v1100_v15 = vmul.f32 %v2603_v60, %v3411_v8  ;;  %2614 = vpow2.f32 %v2114_v43 }
 0x38c   : > { %v1061_v1 = vadd.f32 1.0, %v2605_v13 }
 0x38d   : > { %v2607_v21 = vpop.eup %2606  ;;  %v1127_v22 = vpack.c.bf16 %v1100_v15, %v1099_v54 }
 0x38e   : > { %2616 = vrcp.f32 %v1061_v1  ;;  %v1062_v6 = vadd.f32 1.0, %v2607_v21 }
 0x38f   : > { %2334 = vmatmul.mubr.bf16.gmra.mrb[40].mxu0 %v1127_v22 }
 0x390   : > { %v2609_v24 = vpop.eup %2608  ;;  %2618 = vrcp.f32 %v1062_v6  ;;  %2337 = vmatprep.mubr.msk.bf16.mxu0 %vm2753_vm0, %v2752_v0 }
 0x391   : > { %v1101_v29 = vmul.f32 %v2609_v24, %v3414_v25 }
 0x392   : > { %v2611_v11 = vpop.eup %2610 }
 0x393   : > { %v2613_v30 = vpop.eup %2612  ;;  %v1102_v16 = vmul.f32 %v2611_v11, %v3419_v52 }
 0x394   : > { %v1063_v33 = vadd.f32 1.0, %v2613_v30 }
 0x395   : > { %v2615_v8 = vpop.eup %2614  ;;  %v1128_v56 = vpack.c.bf16 %v1102_v16, %v1101_v29 }
 0x396   : > { %2620 = vrcp.f32 %v1063_v33  ;;  %v1064_v61 = vadd.f32 1.0, %v2615_v8 }
 0x397   : > { %2338 = vmatmul.mubr.bf16.gmra.mrb[44].mxu0 %v1128_v56 }
 0x398   : > { %v2617_v35 = vpop.eup %2616  ;;  %2622 = vrcp.f32 %v1064_v61  ;;  %2341 = vmatprep.mubr.msk.bf16.mxu0 %vm2753_vm0, %v2752_v0 }
 0x399   : > { %v1103_v37 = vmul.f32 %v2617_v35, %v994_v38 }
 0x39a   : > { %v2619_v34 = vpop.eup %2618 }
 0x39b   : > { %v1104_v17 = vmul.f32 %v2619_v34, %v997_v53 }
 0x39d   : > { %v1129_v44 = vpack.c.bf16 %v1104_v17, %v1103_v37 }
 0x39f   : > { %2342 = vmatmul.mubr.bf16.gmra.mrb[48].mxu0 %v1129_v44 }
 0x3a0   : > { %v2621_v46 = vpop.eup %2620  ;;  %2345 = vmatprep.mubr.msk.bf16.mxu0 %vm2753_vm0, %v2752_v0 }
 0x3a1   : > { %v1105_v52 = vmul.f32 %v2621_v46, %v1002_v5 }
 0x3a2   : > { %v2623_v25 = vpop.eup %2622 }
 0x3a3   : > { %v1106_v48 = vmul.f32 %v2623_v25, %v1005_v9 }
 0x3a5   : > { %v1130_v49 = vpack.c.bf16 %v1106_v48, %v1105_v52 }
 0x3a7   : > { %2346 = vmatmul.mubr.bf16.gmra.mrb[52].mxu0 %v1130_v49 }
 0x448   : > { %v1213_v50 = vpop.f32.mrb[28].mxu0 }
 0x449   : > { %v3439_v55 = vadd.f32 %v1213_v50, %v2948_v59  ;;  %v2323_v42 = vpop.f32.mrb[29].mxu0 }
 0x44a   : > { %v1216_v18 = vpop.f32.mrb[30].mxu0 }
 0x44b   : > { %v3442_v38 = vadd.f32 %v1216_v18, %v2951_v63  ;;  %v2324_v53 = vpop.f32.mrb[31].mxu0  ;;  %v1282_v57 = vsel %vm518_vm2, %v3439_v55, 0.0  ;;  %v1324_v59 = vsel %vm518_vm2, 0.0, %v3439_v55 }
 0x44c   : > { %1296 = vadd.xlane.f32.xlu0 %v1282_v57 }
 0x44d   : > { %v1283_v26 = vsel %vm518_vm2, %v3442_v38, 0.0  ;;  %v1325_v63 = vsel %vm518_vm2, 0.0, %v3442_v38 }
 0x44e   : > { %1298 = vadd.xlane.f32.xlu1 %v1283_v26 }
 0x450   : > { %1338 = vadd.xlane.f32.xlu0 %v1324_v59 }
 0x452   : > { %1340 = vadd.xlane.f32.xlu1 %v1325_v63  ;;  %v1221_v2 = vpop.f32.mrb[32].mxu0 }
 0x453   : > { %v3457_v58 = vadd.f32 %v1221_v2, %v2973_v19  ;;  %v2327_v27 = vpop.f32.mrb[33].mxu0 }
 0x454   : > { %v1224_v3 = vpop.f32.mrb[34].mxu0  ;;  %v2476_v27 = vld [vmem:[%s3939_s2 + $0x80] sm:$0xff]  }
 0x455   : > { %v3460_v32 = vadd.f32 %v1224_v3, %v2977_v23  ;;  %v2328_v5 = vpop.f32.mrb[35].mxu0  ;;  %v1284_v7 = vsel %vm518_vm2, %v3457_v58, 0.0  ;;  %v1326_v19 = vsel %vm518_vm2, 0.0, %v3457_v58  ;;  %2350 = vmatpush3.bf16.msra.mxu1 %v2476_v27  ;;  %v2477_v3 = vld [vmem:[%s3939_s2 + $0x88] sm:$0xff]  }
 0x456   : > { %1300 = vadd.xlane.f32.xlu0 %v1284_v7  ;;  %2351 = vmatprep.subr.bf16.mxu1 %v2752_v0  ;;  %v2478_v5 = vld [vmem:[%s3939_s2 + $0x90] sm:$0xff]   ;;  %v2479_v7 = vld [vmem:[%s3939_s2 + $0x98] sm:$0xff]  }
 0x457   : > { %v1285_v41 = vsel %vm518_vm2, %v3460_v32, 0.0  ;;  %v1327_v43 = vsel %vm518_vm2, 0.0, %v3460_v32 }
 0x458   : > { %1302 = vadd.xlane.f32.xlu1 %v1285_v41 }
 0x459   : > { %2352 = vmatpush3.bf16.msra.mxu1 %v2477_v3 }
 0x45a   : > { %1342 = vadd.xlane.f32.xlu0 %v1326_v19  ;;  %v1229_v51 = vpop.f32.mrb[36].mxu0  ;;  %2353 = vmatprep.subr.bf16.mxu1 %v2752_v0 }
 0x45b   : > { %v3472_v23 = vadd.f32 %v1229_v51, %v2996_v39  ;;  %v2331_v9 = vpop.f32.mrb[37].mxu0 }
 0x45c   : > { %1344 = vadd.xlane.f32.xlu1 %v1327_v43  ;;  %v1232_v10 = vpop.f32.mrb[38].mxu0 }
 0x45d   : > { %v3478_v60 = vadd.f32 %v1232_v10, %v3003_v45  ;;  %v2332_v13 = vpop.f32.mrb[39].mxu0  ;;  %v1286_v54 = vsel %vm518_vm2, %v3472_v23, 0.0  ;;  %v1328_v15 = vsel %vm518_vm2, 0.0, %v3472_v23  ;;  %2354 = vmatpush3.bf16.msra.mxu1 %v2478_v5 }
 0x45e   : > { %1304 = vadd.xlane.f32.xlu0 %v1286_v54  ;;  %2355 = vmatprep.subr.bf16.mxu1 %v2752_v0 }
 0x45f   : > { %v1287_v39 = vsel %vm518_vm2, %v3478_v60, 0.0  ;;  %v1329_v22 = vsel %vm518_vm2, 0.0, %v3478_v60 }
 0x460   : > { %1306 = vadd.xlane.f32.xlu1 %v1287_v39 }
 0x461   : > { %2356 = vmatpush3.bf16.msra.mxu1 %v2479_v7 }
 0x462   : > { %1346 = vadd.xlane.f32.xlu0 %v1328_v15  ;;  %v1237_v1 = vpop.f32.mrb[40].mxu0  ;;  %2357 = vmatprep.subr.bf16.mxu1 %v2752_v0 }
 0x463   : > { %v3490_v45 = vadd.f32 %v1237_v1, %v3020_v62  ;;  %v2335_v21 = vpop.f32.mrb[41].mxu0 }
 0x464   : > { %1348 = vadd.xlane.f32.xlu1 %v1329_v22  ;;  %v1240_v6 = vpop.f32.mrb[42].mxu0 }
 0x465   : > { %v3496_v24 = vadd.f32 %v1240_v6, %v3026_v4  ;;  %v2336_v11 = vpop.f32.mrb[43].mxu0  ;;  %v1288_v30 = vsel %vm518_vm2, %v3490_v45, 0.0  ;;  %v1330_v29 = vsel %vm518_vm2, 0.0, %v3490_v45 }
 0x466   : > { %1308 = vadd.xlane.f32.xlu0 %v1288_v30 }
 0x467   : > { %v1289_v62 = vsel %vm518_vm2, %v3496_v24, 0.0  ;;  %v1331_v8 = vsel %vm518_vm2, 0.0, %v3496_v24 }
 0x468   : > { %1310 = vadd.xlane.f32.xlu1 %v1289_v62 }
 0x46a   : > { %1350 = vadd.xlane.f32.xlu0 %v1330_v29  ;;  %v1245_v16 = vpop.f32.mrb[44].mxu0 }
 0x46b   : > { %v3508_v4 = vadd.f32 %v1245_v16, %v3038_v12  ;;  %v2339_v33 = vpop.f32.mrb[45].mxu0 }
 0x46c   : > { %1352 = vadd.xlane.f32.xlu1 %v1331_v8  ;;  %v1248_v56 = vpop.f32.mrb[46].mxu0 }
 0x46d   : > { %v3514_v61 = vadd.f32 %v1248_v56, %v3044_v20  ;;  %v2340_v35 = vpop.f32.mrb[47].mxu0  ;;  %v1290_v34 = vsel %vm518_vm2, %v3508_v4, 0.0  ;;  %v1332_v37 = vsel %vm518_vm2, 0.0, %v3508_v4 }
 0x46e   : > { %1312 = vadd.xlane.f32.xlu0 %v1290_v34 }
 0x46f   : > { %v1291_v12 = vsel %vm518_vm2, %v3514_v61, 0.0  ;;  %v1333_v46 = vsel %vm518_vm2, 0.0, %v3514_v61 }
 0x470   : > { %1314 = vadd.xlane.f32.xlu1 %v1291_v12 }
 0x472   : > { %1354 = vadd.xlane.f32.xlu0 %v1332_v37  ;;  %v1253_v17 = vpop.f32.mrb[48].mxu0 }
 0x473   : > { %v3526_v20 = vadd.f32 %v1253_v17, %v3056_v28  ;;  %v2343_v44 = vpop.f32.mrb[49].mxu0 }
 0x474   : > { %1356 = vadd.xlane.f32.xlu1 %v1333_v46  ;;  %v1256_v25 = vpop.f32.mrb[50].mxu0 }
 0x475   : > { %v3532_v52 = vadd.f32 %v1256_v25, %v3062_v31  ;;  %v2344_v48 = vpop.f32.mrb[51].mxu0  ;;  %v1292_v49 = vsel %vm518_vm2, %v3526_v20, 0.0  ;;  %v1334_v50 = vsel %vm518_vm2, 0.0, %v3526_v20 }
 0x476   : > { %1316 = vadd.xlane.f32.xlu0 %v1292_v49 }
 0x477   : > { %v1293_v28 = vsel %vm518_vm2, %v3532_v52, 0.0  ;;  %v1335_v53 = vsel %vm518_vm2, 0.0, %v3532_v52 }
 0x478   : > { %1318 = vadd.xlane.f32.xlu1 %v1293_v28 }
 0x47a   : > { %1358 = vadd.xlane.f32.xlu0 %v1334_v50  ;;  %v1261_v42 = vpop.f32.mrb[52].mxu0 }
 0x47b   : > { %v3544_v31 = vadd.f32 %v1261_v42, %v3074_v36  ;;  %v2347_v18 = vpop.f32.mrb[53].mxu0 }
 0x47c   : > { %1360 = vadd.xlane.f32.xlu1 %v1335_v53  ;;  %v1264_v57 = vpop.f32.mrb[54].mxu0 }
 0x47d   : > { %v3550_v26 = vadd.f32 %v1264_v57, %v3079_v40  ;;  %v2348_v59 = vpop.f32.mrb[55].mxu0  ;;  %v1294_v63 = vsel %vm518_vm2, %v3544_v31, 0.0  ;;  %v1336_v2 = vsel %vm518_vm2, 0.0, %v3544_v31 }
 0x47e   : > { %1320 = vadd.xlane.f32.xlu0 %v1294_v63 }
 0x47f   : > { %v1295_v36 = vsel %vm518_vm2, %v3550_v26, 0.0  ;;  %v1337_v40 = vsel %vm518_vm2, 0.0, %v3550_v26 }
 0x480   : > { %1322 = vadd.xlane.f32.xlu1 %v1295_v36 }
 0x482   : > { %1362 = vadd.xlane.f32.xlu0 %v1336_v2 }
 0x484   : > { %1364 = vadd.xlane.f32.xlu1 %v1337_v40 }
 0x4d9   : > { %v1297_v41 = vpop.xlane.xlu0 %1296 }
 0x4db   : > { %v1299_v19 = vpop.xlane.xlu1 %1298 }
 0x4dd   : > { %v1339_v51 = vpop.xlane.xlu0 %1338 }
 0x4de   : > { %v1366_v9 = vsel %vm518_vm2, %v1297_v41, %v1339_v51 }
 0x4df   : > { %v1380_v43 = vmul.f32 0.015625, %v1366_v9  ;;  %v1341_v10 = vpop.xlane.xlu1 %1340 }
 0x4e0   : > { %v1367_v13 = vsel %vm518_vm2, %v1299_v19, %v1341_v10 }
 0x4e1   : > { %v3585_v54 = vsub.f32 %v3439_v55, %v1380_v43  ;;  %v1381_v39 = vmul.f32 0.015625, %v1367_v13 }
 0x4e3   : > { %v3588_v15 = vsub.f32 %v3442_v38, %v1381_v39  ;;  %v1301_v1 = vpop.xlane.xlu0 %1300  ;;  %v1408_v21 = vmul.f32 %v3585_v54, %v3585_v54 }
 0x4e5   : > { %v1303_v22 = vpop.xlane.xlu1 %1302  ;;  %v1422_v6 = vsel %vm518_vm2, %v1408_v21, 0.0  ;;  %v1409_v11 = vmul.f32 %v3588_v15, %v3588_v15  ;;  %v1464_v16 = vsel %vm518_vm2, 0.0, %v1408_v21 }
 0x4e6   : > { %1436 = vadd.xlane.f32.xlu0 %v1422_v6 }
 0x4e7   : > { %v1343_v30 = vpop.xlane.xlu0 %1342  ;;  %v1423_v55 = vsel %vm518_vm2, %v1409_v11, 0.0  ;;  %v1465_v34 = vsel %vm518_vm2, 0.0, %v1409_v11 }
 0x4e8   : > { %v1368_v38 = vsel %vm518_vm2, %v1301_v1, %v1343_v30  ;;  %1438 = vadd.xlane.f32.xlu1 %v1423_v55  ;;  %v2480_v30 = vld [vmem:[%s3939_s2 + $0xa0] sm:$0xff]  }
 0x4e9   : > { %v1382_v62 = vmul.f32 0.015625, %v1368_v38  ;;  %v1345_v29 = vpop.xlane.xlu1 %1344  ;;  %2358 = vmatpush3.bf16.msra.mxu1 %v2480_v30 }
 0x4ea   : > { %v1369_v33 = vsel %vm518_vm2, %v1303_v22, %v1345_v29  ;;  %1478 = vadd.xlane.f32.xlu0 %v1464_v16  ;;  %2359 = vmatprep.subr.bf16.mxu1 %v2752_v0 }
 0x4eb   : > { %v3605_v8 = vsub.f32 %v3457_v58, %v1382_v62  ;;  %v1383_v56 = vmul.f32 0.015625, %v1369_v33  ;;  %v1305_v35 = vpop.xlane.xlu0 %1304 }
 0x4ec   : > { %1480 = vadd.xlane.f32.xlu1 %v1465_v34  ;;  %v2481_v34 = vld [vmem:[%s3939_s2 + $0xa8] sm:$0xff]  }
 0x4ed   : > { %v3610_v12 = vsub.f32 %v3460_v32, %v1383_v56  ;;  %v1307_v37 = vpop.xlane.xlu1 %1306  ;;  %v1410_v17 = vmul.f32 %v3605_v8, %v3605_v8  ;;  %2360 = vmatpush3.bf16.msra.mxu1 %v2481_v34 }
 0x4ee   : > { %2361 = vmatprep.subr.bf16.mxu1 %v2752_v0 }
 0x4ef   : > { %v1347_v44 = vpop.xlane.xlu0 %1346  ;;  %v1424_v46 = vsel %vm518_vm2, %v1410_v17, 0.0  ;;  %v1411_v58 = vmul.f32 %v3610_v12, %v3610_v12  ;;  %v1466_v53 = vsel %vm518_vm2, 0.0, %v1410_v17 }
 0x4f0   : > { %v1370_v25 = vsel %vm518_vm2, %v1305_v35, %v1347_v44  ;;  %1440 = vadd.xlane.f32.xlu0 %v1424_v46 }
 0x4f1   : > { %v1384_v48 = vmul.f32 0.015625, %v1370_v25  ;;  %v1349_v49 = vpop.xlane.xlu1 %1348  ;;  %v1425_v32 = vsel %vm518_vm2, %v1411_v58, 0.0  ;;  %v1467_v63 = vsel %vm518_vm2, 0.0, %v1411_v58 }
 0x4f2   : > { %v1371_v28 = vsel %vm518_vm2, %v1307_v37, %v1349_v49  ;;  %1442 = vadd.xlane.f32.xlu1 %v1425_v32 }
 0x4f3   : > { %v3625_v50 = vsub.f32 %v3472_v23, %v1384_v48  ;;  %v1385_v42 = vmul.f32 0.015625, %v1371_v28  ;;  %v1309_v18 = vpop.xlane.xlu0 %1308  ;;  %v2482_v48 = vld [vmem:[%s3939_s2 + $0xb0] sm:$0xff]  }
 0x4f4   : > { %1482 = vadd.xlane.f32.xlu0 %v1466_v53  ;;  %2362 = vmatpush3.bf16.msra.mxu1 %v2482_v48  ;;  %v3761_v48 = vld [vmem:[%s3940_s3] sm:$0x3f] }
 0x4f5   : > { %v3630_v57 = vsub.f32 %v3478_v60, %v1385_v42  ;;  %v1311_v59 = vpop.xlane.xlu1 %1310  ;;  %v1412_v36 = vmul.f32 %v3625_v50, %v3625_v50  ;;  %2363 = vmatprep.subr.bf16.mxu1 %v2752_v0 }
 0x4f6   : > { %1484 = vadd.xlane.f32.xlu1 %v1467_v63 }
 0x4f7   : > { %v1351_v2 = vpop.xlane.xlu0 %1350  ;;  %v1426_v23 = vsel %vm518_vm2, %v1412_v36, 0.0  ;;  %v1413_v40 = vmul.f32 %v3630_v57, %v3630_v57  ;;  %v1468_v9 = vsel %vm518_vm2, 0.0, %v1412_v36  ;;  %v2483_v36 = vld [vmem:[%s3939_s2 + $0xb8] sm:$0xff]  }
 0x4f8   : > { %v1372_v27 = vsel %vm518_vm2, %v1309_v18, %v1351_v2  ;;  %1444 = vadd.xlane.f32.xlu0 %v1426_v23  ;;  %2364 = vmatpush3.bf16.msra.mxu1 %v2483_v36 }
 0x4f9   : > { %v1386_v60 = vmul.f32 0.015625, %v1372_v27  ;;  %v1353_v3 = vpop.xlane.xlu1 %1352  ;;  %v1427_v5 = vsel %vm518_vm2, %v1413_v40, 0.0  ;;  %v1469_v13 = vsel %vm518_vm2, 0.0, %v1413_v40 }
 0x4fa   : > { %v1373_v7 = vsel %vm518_vm2, %v1311_v59, %v1353_v3  ;;  %1446 = vadd.xlane.f32.xlu1 %v1427_v5 }
 0x4fb   : > { %v3647_v41 = vsub.f32 %v3490_v45, %v1386_v60  ;;  %v1387_v19 = vmul.f32 0.015625, %v1373_v7  ;;  %v1313_v51 = vpop.xlane.xlu0 %1312 }
 0x4fc   : > { %1486 = vadd.xlane.f32.xlu0 %v1468_v9 }
 0x4fd   : > { %v3652_v43 = vsub.f32 %v3496_v24, %v1387_v19  ;;  %v1315_v10 = vpop.xlane.xlu1 %1314  ;;  %v1414_v39 = vmul.f32 %v3647_v41, %v3647_v41 }
 0x4fe   : > { %1488 = vadd.xlane.f32.xlu1 %v1469_v13 }
 0x4ff   : > { %v1355_v1 = vpop.xlane.xlu0 %1354  ;;  %v1428_v45 = vsel %vm518_vm2, %v1414_v39, 0.0  ;;  %v1415_v21 = vmul.f32 %v3652_v43, %v3652_v43  ;;  %v1470_v16 = vsel %vm518_vm2, 0.0, %v1414_v39 }
 0x500   : > { %v1374_v22 = vsel %vm518_vm2, %v1313_v51, %v1355_v1  ;;  %1448 = vadd.xlane.f32.xlu0 %v1428_v45 }
 0x501   : > { %v1388_v24 = vmul.f32 0.015625, %v1374_v22  ;;  %v1357_v6 = vpop.xlane.xlu1 %1356  ;;  %v1429_v11 = vsel %vm518_vm2, %v1415_v21, 0.0  ;;  %v1471_v35 = vsel %vm518_vm2, 0.0, %v1415_v21 }
 0x502   : > { %v1375_v55 = vsel %vm518_vm2, %v1315_v10, %v1357_v6  ;;  %1450 = vadd.xlane.f32.xlu1 %v1429_v11 }
 0x503   : > { %v3672_v38 = vsub.f32 %v3508_v4, %v1388_v24  ;;  %v1389_v62 = vmul.f32 0.015625, %v1375_v55  ;;  %v1317_v29 = vpop.xlane.xlu0 %1316 }
 0x504   : > { %1490 = vadd.xlane.f32.xlu0 %v1470_v16 }
 0x505   : > { %v3678_v33 = vsub.f32 %v3514_v61, %v1389_v62  ;;  %v1319_v56 = vpop.xlane.xlu1 %1318  ;;  %v1416_v4 = vmul.f32 %v3672_v38, %v3672_v38 }
 0x506   : > { %1492 = vadd.xlane.f32.xlu1 %v1471_v35 }
 0x507   : > { %v1359_v37 = vpop.xlane.xlu0 %1358  ;;  %v1430_v17 = vsel %vm518_vm2, %v1416_v4, 0.0  ;;  %v1417_v61 = vmul.f32 %v3678_v33, %v3678_v33  ;;  %v1472_v18 = vsel %vm518_vm2, 0.0, %v1416_v4 }
 0x508   : > { %v1376_v44 = vsel %vm518_vm2, %v1317_v29, %v1359_v37  ;;  %1452 = vadd.xlane.f32.xlu0 %v1430_v17  ;;  %v1578_v37 = vsub.s32 3, %v2909_v14 }
 0x509   : > { %v1390_v46 = vmul.f32 0.015625, %v1376_v44  ;;  %v1361_v58 = vpop.xlane.xlu1 %1360  ;;  %v1431_v25 = vsel %vm518_vm2, %v1417_v61, 0.0  ;;  %v1473_v63 = vsel %vm518_vm2, 0.0, %v1417_v61 }
 0x50a   : > { %v1377_v49 = vsel %vm518_vm2, %v1319_v56, %v1361_v58  ;;  %1454 = vadd.xlane.f32.xlu1 %v1431_v25 }
 0x50b   : > { %v3702_v32 = vsub.f32 %v3526_v20, %v1390_v46  ;;  %v1391_v28 = vmul.f32 0.015625, %v1377_v49  ;;  %v1321_v42 = vpop.xlane.xlu0 %1320  ;;  %v3764_v49 = vrot.slane %v3761_v48, %v1578_v37 }
 0x50c   : > { %1494 = vadd.xlane.f32.xlu0 %v1472_v18 }
 0x50d   : > { %v3708_v53 = vsub.f32 %v3532_v52, %v1391_v28  ;;  %v1323_v59 = vpop.xlane.xlu1 %1322  ;;  %v1418_v20 = vmul.f32 %v3702_v32, %v3702_v32  ;;  %v1596_v28 = vsub.s32 4, %v2909_v14 }
 0x50e   : > { %1496 = vadd.xlane.f32.xlu1 %v1473_v63 }
 0x50f   : > { %v1363_v2 = vpop.xlane.xlu0 %1362  ;;  %v1432_v23 = vsel %vm518_vm2, %v1418_v20, 0.0  ;;  %v1419_v52 = vmul.f32 %v3708_v53, %v3708_v53  ;;  %v1474_v51 = vsel %vm518_vm2, 0.0, %v1418_v20 }
 0x510   : > { %v1378_v40 = vsel %vm518_vm2, %v1321_v42, %v1363_v2  ;;  %1456 = vadd.xlane.f32.xlu0 %v1432_v23 }
 0x511   : > { %v1392_v27 = vmul.f32 0.015625, %v1378_v40  ;;  %v1365_v60 = vpop.xlane.xlu1 %1364  ;;  %v1433_v3 = vsel %vm518_vm2, %v1419_v52, 0.0  ;;  %v1475_v10 = vsel %vm518_vm2, 0.0, %v1419_v52  ;;  %v3773_v40 = vrot.slane %v3761_v48, %v1596_v28 }
 0x512   : > { %v1379_v5 = vsel %vm518_vm2, %v1323_v59, %v1365_v60  ;;  %1458 = vadd.xlane.f32.xlu1 %v1433_v3 }
 0x513   : > { %v3728_v7 = vsub.f32 %v3544_v31, %v1392_v27  ;;  %v1393_v19 = vmul.f32 0.015625, %v1379_v5 }
 0x514   : > { %1498 = vadd.xlane.f32.xlu0 %v1474_v51 }
 0x515   : > { %v3733_v9 = vsub.f32 %v3550_v26, %v1393_v19  ;;  %v1420_v13 = vmul.f32 %v3728_v7, %v3728_v7 }
 0x516   : > { %1500 = vadd.xlane.f32.xlu1 %v1475_v10 }
 0x517   : > { %v1434_v39 = vsel %vm518_vm2, %v1420_v13, 0.0  ;;  %v1421_v31 = vmul.f32 %v3733_v9, %v3733_v9  ;;  %v1476_v26 = vsel %vm518_vm2, 0.0, %v1420_v13 }
 0x518   : > { %1460 = vadd.xlane.f32.xlu0 %v1434_v39 }
 0x519   : > { %v1435_v1 = vsel %vm518_vm2, %v1421_v31, 0.0  ;;  %v1477_v45 = vsel %vm518_vm2, 0.0, %v1421_v31 }
 0x51a   : > { %1462 = vadd.xlane.f32.xlu1 %v1435_v1 }
 0x51c   : > { %1502 = vadd.xlane.f32.xlu0 %v1476_v26 }
 0x51e   : > { %1504 = vadd.xlane.f32.xlu1 %v1477_v45 }
 0x573   : > { %v1437_v21 = vpop.xlane.xlu0 %1436 }
 0x575   : > { %v1439_v22 = vpop.xlane.xlu1 %1438 }
 0x577   : > { %v1479_v24 = vpop.xlane.xlu0 %1478 }
 0x578   : > { %v1506_v6 = vsel %vm518_vm2, %v1437_v21, %v1479_v24 }
 0x579   : > { %v1520_v11 = vmul.f32 0.015625, %v1506_v6  ;;  %v1481_v30 = vpop.xlane.xlu1 %1480 }
 0x57a   : > { %v1507_v55 = vsel %vm518_vm2, %v1439_v22, %v1481_v30 }
 0x57b   : > { %v1534_v62 = vadd.f32 1e-05, %v1520_v11  ;;  %v1521_v29 = vmul.f32 0.015625, %v1507_v55 }
 0x57d   : > { %2624 = vrsqrt.f32 %v1534_v62  ;;  %v1535_v16 = vadd.f32 1e-05, %v1521_v29  ;;  %v1441_v56 = vpop.xlane.xlu0 %1440 }
 0x57f   : > { %2626 = vrsqrt.f32 %v1535_v16  ;;  %v1443_v35 = vpop.xlane.xlu1 %1442 }
 0x581   : > { %v1483_v4 = vpop.xlane.xlu0 %1482 }
 0x582   : > { %v1508_v34 = vsel %vm518_vm2, %v1441_v56, %v1483_v4 }
 0x583   : > { %v1522_v17 = vmul.f32 0.015625, %v1508_v34  ;;  %v1485_v61 = vpop.xlane.xlu1 %1484 }
 0x584   : > { %v1509_v44 = vsel %vm518_vm2, %v1443_v35, %v1485_v61 }
 0x585   : > { %v1536_v46 = vadd.f32 1e-05, %v1522_v17  ;;  %v1523_v58 = vmul.f32 0.015625, %v1509_v44  ;;  %v1445_v25 = vpop.xlane.xlu0 %1444 }
 0x587   : > { %v2625_v42 = vpop.eup %2624  ;;  %2628 = vrsqrt.f32 %v1536_v46  ;;  %v1537_v18 = vadd.f32 1e-05, %v1523_v58  ;;  %v1447_v59 = vpop.xlane.xlu1 %1446 }
 0x588   : > { %v1562_v63 = vmul.f32 %v2625_v42, %v3585_v54 }
 0x589   : > { %v2627_v20 = vpop.eup %2626  ;;  %2630 = vrsqrt.f32 %v1537_v18  ;;  %v1487_v36 = vpop.xlane.xlu0 %1486 }
 0x58a   : > { %v1563_v2 = vmul.f32 %v2627_v20, %v3588_v15  ;;  %v1510_v23 = vsel %vm518_vm2, %v1445_v25, %v1487_v36  ;;  %v1580_v52 = vmul.f32 %v3764_v49, %v1562_v63 }
 0x58b   : > { %v1524_v27 = vmul.f32 0.015625, %v1510_v23  ;;  %v1489_v60 = vpop.xlane.xlu1 %1488 }
 0x58c   : > { %v1511_v3 = vsel %vm518_vm2, %v1447_v59, %v1489_v60  ;;  %v1581_v54 = vmul.f32 %v3764_v49, %v1563_v2  ;;  %v1598_v15 = vadd.f32 %v3773_v40, %v1580_v52 }
 0x58d   : > { %v1538_v5 = vadd.f32 1e-05, %v1524_v27  ;;  %v1525_v19 = vmul.f32 0.015625, %v1511_v3  ;;  %v1449_v51 = vpop.xlane.xlu0 %1448 }
 0x58e   : > { %v1599_v10 = vadd.f32 %v3773_v40, %v1581_v54 }
 0x58f   : > { %2632 = vrsqrt.f32 %v1538_v5  ;;  %v1539_v13 = vadd.f32 1e-05, %v1525_v19  ;;  %v1451_v39 = vpop.xlane.xlu1 %1450 }
 0x590   : > { %v1629_v31 = vpack.c.bf16 %v1599_v10, %v1598_v15 }
 0x591   : > { %v2629_v1 = vpop.eup %2628  ;;  %2634 = vrsqrt.f32 %v1539_v13  ;;  %v1491_v26 = vpop.xlane.xlu0 %1490 }
 0x592   : > { %v1512_v45 = vsel %vm518_vm2, %v1449_v51, %v1491_v26  ;;  %2366 = vmatmul.mubr.bf16.vlgmr.msra.gmra.mrb[28].mxu1 %v1629_v31  ;;  %v1564_v21 = vmul.f32 %v2629_v1, %v3605_v8 }
 0x593   : > { %v2631_v22 = vpop.eup %2630  ;;  %v1526_v24 = vmul.f32 0.015625, %v1512_v45  ;;  %v1493_v6 = vpop.xlane.xlu1 %1492  ;;  %2369 = vmatprep.mubr.msk.bf16.mxu1 %vm2753_vm0, %v2752_v0 }
 0x594   : > { %v1513_v11 = vsel %vm518_vm2, %v1451_v39, %v1493_v6  ;;  %v1565_v30 = vmul.f32 %v2631_v22, %v3610_v12  ;;  %v1582_v55 = vmul.f32 %v3764_v49, %v1564_v21 }
 0x595   : > { %v1540_v62 = vadd.f32 1e-05, %v1526_v24  ;;  %v1527_v29 = vmul.f32 0.015625, %v1513_v11  ;;  %v1453_v16 = vpop.xlane.xlu0 %1452 }
 0x596   : > { %v1583_v56 = vmul.f32 %v3764_v49, %v1565_v30  ;;  %v1600_v4 = vadd.f32 %v3773_v40, %v1582_v55 }
 0x597   : > { %2636 = vrsqrt.f32 %v1540_v62  ;;  %v1541_v8 = vadd.f32 1e-05, %v1527_v29  ;;  %v1455_v35 = vpop.xlane.xlu1 %1454 }
 0x598   : > { %v1601_v34 = vadd.f32 %v3773_v40, %v1583_v56 }
 0x599   : > { %v2633_v37 = vpop.eup %2632  ;;  %2638 = vrsqrt.f32 %v1541_v8  ;;  %v1495_v17 = vpop.xlane.xlu0 %1494 }
 0x59a   : > { %v1514_v12 = vsel %vm518_vm2, %v1453_v16, %v1495_v17  ;;  %v1630_v61 = vpack.c.bf16 %v1601_v34, %v1600_v4  ;;  %v1566_v44 = vmul.f32 %v2633_v37, %v3625_v50 }
 0x59b   : > { %v2635_v46 = vpop.eup %2634  ;;  %v1528_v58 = vmul.f32 0.015625, %v1514_v12  ;;  %v1497_v25 = vpop.xlane.xlu1 %1496 }
 0x59c   : > { %v1515_v28 = vsel %vm518_vm2, %v1455_v35, %v1497_v25  ;;  %2370 = vmatmul.mubr.bf16.gmra.mrb[32].mxu1 %v1630_v61  ;;  %v1567_v42 = vmul.f32 %v2635_v46, %v3630_v57  ;;  %v1584_v18 = vmul.f32 %v3764_v49, %v1566_v44 }
 0x59d   : > { %v1542_v59 = vadd.f32 1e-05, %v1528_v58  ;;  %v1529_v63 = vmul.f32 0.015625, %v1515_v28  ;;  %v1457_v20 = vpop.xlane.xlu0 %1456  ;;  %2373 = vmatprep.mubr.msk.bf16.mxu1 %vm2753_vm0, %v2752_v0 }
 0x59e   : > { %v1585_v36 = vmul.f32 %v3764_v49, %v1567_v42  ;;  %v1602_v23 = vadd.f32 %v3773_v40, %v1584_v18 }
 0x59f   : > { %2640 = vrsqrt.f32 %v1542_v59  ;;  %v1543_v50 = vadd.f32 1e-05, %v1529_v63  ;;  %v1459_v2 = vpop.xlane.xlu1 %1458 }
 0x5a0   : > { %v1603_v52 = vadd.f32 %v3773_v40, %v1585_v36 }
 0x5a1   : > { %v2637_v27 = vpop.eup %2636  ;;  %2642 = vrsqrt.f32 %v1543_v50  ;;  %v1499_v57 = vpop.xlane.xlu0 %1498 }
 0x5a2   : > { %v1516_v60 = vsel %vm518_vm2, %v1457_v20, %v1499_v57  ;;  %v1631_v3 = vpack.c.bf16 %v1603_v52, %v1602_v23  ;;  %v1568_v54 = vmul.f32 %v2637_v27, %v3647_v41  ;;  %v1638_v52 = vsub.s32 5, %v2909_v14 }
 0x5a3   : > { %v2639_v5 = vpop.eup %2638  ;;  %v1530_v19 = vmul.f32 0.015625, %v1516_v60  ;;  %v1501_v51 = vpop.xlane.xlu1 %1500 }
 0x5a4   : > { %v1517_v15 = vsel %vm518_vm2, %v1459_v2, %v1501_v51  ;;  %2374 = vmatmul.mubr.bf16.gmra.mrb[36].mxu1 %v1631_v3  ;;  %v1569_v10 = vmul.f32 %v2639_v5, %v3652_v43  ;;  %v1586_v13 = vmul.f32 %v3764_v49, %v1568_v54 }
 0x5a5   : > { %v1544_v39 = vadd.f32 1e-05, %v1530_v19  ;;  %v1531_v31 = vmul.f32 0.015625, %v1517_v15  ;;  %v1461_v1 = vpop.xlane.xlu0 %1460  ;;  %2377 = vmatprep.mubr.msk.bf16.mxu1 %vm2753_vm0, %v2752_v0 }
 0x5a6   : > { %v1587_v26 = vmul.f32 %v3764_v49, %v1569_v10  ;;  %v1604_v21 = vadd.f32 %v3773_v40, %v1586_v13 }
 0x5a7   : > { %2644 = vrsqrt.f32 %v1544_v39  ;;  %v1545_v41 = vadd.f32 1e-05, %v1531_v31  ;;  %v1463_v45 = vpop.xlane.xlu1 %1462 }
 0x5a8   : > { %v1605_v22 = vadd.f32 %v3773_v40, %v1587_v26 }
 0x5a9   : > { %v2641_v24 = vpop.eup %2640  ;;  %2646 = vrsqrt.f32 %v1545_v41  ;;  %v1503_v43 = vpop.xlane.xlu0 %1502 }
 0x5aa   : > { %v1518_v6 = vsel %vm518_vm2, %v1461_v1, %v1503_v43  ;;  %v1632_v11 = vpack.c.bf16 %v1605_v22, %v1604_v21  ;;  %v1570_v30 = vmul.f32 %v2641_v24, %v3672_v38 }
 0x5ab   : > { %v2643_v55 = vpop.eup %2642  ;;  %v1532_v62 = vmul.f32 0.015625, %v1518_v6  ;;  %v1505_v29 = vpop.xlane.xlu1 %1504 }
 0x5ac   : > { %v1519_v16 = vsel %vm518_vm2, %v1463_v45, %v1505_v29  ;;  %2378 = vmatmul.mubr.bf16.gmra.mrb[40].mxu1 %v1632_v11  ;;  %v1571_v56 = vmul.f32 %v2643_v55, %v3678_v33  ;;  %v1588_v8 = vmul.f32 %v3764_v49, %v1570_v30 }
 0x5ad   : > { %v1546_v35 = vadd.f32 1e-05, %v1532_v62  ;;  %v1533_v4 = vmul.f32 0.015625, %v1519_v16  ;;  %2381 = vmatprep.mubr.msk.bf16.mxu1 %vm2753_vm0, %v2752_v0 }
 0x5ae   : > { %v1589_v34 = vmul.f32 %v3764_v49, %v1571_v56  ;;  %v1606_v37 = vadd.f32 %v3773_v40, %v1588_v8 }
 0x5af   : > { %2648 = vrsqrt.f32 %v1546_v35  ;;  %v1547_v38 = vadd.f32 1e-05, %v1533_v4 }
 0x5b0   : > { %v1607_v17 = vadd.f32 %v3773_v40, %v1589_v34 }
 0x5b1   : > { %v2645_v12 = vpop.eup %2644  ;;  %2650 = vrsqrt.f32 %v1547_v38 }
 0x5b2   : > { %v1633_v61 = vpack.c.bf16 %v1607_v17, %v1606_v37  ;;  %v1572_v33 = vmul.f32 %v2645_v12, %v3702_v32 }
 0x5b3   : > { %v2647_v44 = vpop.eup %2646 }
 0x5b4   : > { %2382 = vmatmul.mubr.bf16.gmra.mrb[44].mxu1 %v1633_v61  ;;  %v1573_v46 = vmul.f32 %v2647_v44, %v3708_v53  ;;  %v1590_v58 = vmul.f32 %v3764_v49, %v1572_v33 }
 0x5b5   : > { %2385 = vmatprep.mubr.msk.bf16.mxu1 %vm2753_vm0, %v2752_v0 }
 0x5b6   : > { %v1591_v25 = vmul.f32 %v3764_v49, %v1573_v46  ;;  %v1608_v28 = vadd.f32 %v3773_v40, %v1590_v58 }
 0x5b8   : > { %v1609_v42 = vadd.f32 %v3773_v40, %v1591_v25 }
 0x5b9   : > { %v2649_v18 = vpop.eup %2648 }
 0x5ba   : > { %v1634_v59 = vpack.c.bf16 %v1609_v42, %v1608_v28  ;;  %v1574_v63 = vmul.f32 %v2649_v18, %v3728_v7  ;;  %v1639_v7 = vrot.slane %v3761_v48, %v1638_v52 }
 0x5bb   : > { %v2651_v32 = vpop.eup %2650 }
 0x5bc   : > { %2386 = vmatmul.mubr.bf16.gmra.mrb[48].mxu1 %v1634_v59  ;;  %v1575_v20 = vmul.f32 %v2651_v32, %v3733_v9  ;;  %v1592_v53 = vmul.f32 %v3764_v49, %v1574_v63 }
 0x5bd   : > { %2389 = vmatprep.mubr.msk.bf16.mxu1 %vm2753_vm0, %v2752_v0  ;;  %vm1971_vm0 = vcmask 909312  }
 0x5be   : > { %v1593_v36 = vmul.f32 %v3764_v49, %v1575_v20  ;;  %v1610_v50 = vadd.f32 %v3773_v40, %v1592_v53 }
 0x5c0   : > { %v1611_v2 = vadd.f32 %v3773_v40, %v1593_v36 }
 0x5c2   : > { %v1635_v23 = vpack.c.bf16 %v1611_v2, %v1610_v50 }
 0x5c4   : > { %2390 = vmatmul.mubr.bf16.gmra.mrb[52].mxu1 %v1635_v23 }
 0x665   : > { %v1722_v27 = vpop.f32.mrb[28].mxu1 }
 0x666   : > { %v1723_v57 = vadd.f32 %v1722_v27, %v1639_v7  ;;  %v2367_v9 = vpop.f32.mrb[29].mxu1 }
 0x667   : > { %v1725_v60 = vpop.f32.mrb[30].mxu1 }
 0x668   : > { %v1726_v3 = vadd.f32 %v1725_v60, %v1639_v7  ;;  %1777 = vrot.lane.b32.xlu0 %v1723_v57, %s2754_s6  ;;  %v2368_v0 = vpop.f32.mrb[31].mxu1 }
 0x66a   : > { %1779 = vrot.lane.b32.xlu1 %v1726_v3, %s2754_s6 }
 0x66f   : > { %v1730_v49 = vpop.f32.mrb[32].mxu1 }
 0x670   : > { %v1731_v54 = vadd.f32 %v1730_v49, %v1639_v7  ;;  %v2371_v40 = vpop.f32.mrb[33].mxu1 }
 0x671   : > { %v1733_v5 = vpop.f32.mrb[34].mxu1 }
 0x672   : > { %1781 = vrot.lane.b32.xlu1 %v1731_v54, %s2754_s6  ;;  %v2372_v19 = vpop.f32.mrb[35].mxu1  ;;  %v1734_v51 = vadd.f32 %v1733_v5, %v1639_v7 }
 0x676   : > { %1783 = vrot.lane.b32.xlu1 %v1734_v51, %s2754_s6 }
 0x677   : > { %v1738_v48 = vpop.f32.mrb[36].mxu1 }
 0x678   : > { %v1739_v15 = vadd.f32 %v1738_v48, %v1639_v7  ;;  %v2375_v10 = vpop.f32.mrb[37].mxu1 }
 0x679   : > { %v1741_v13 = vpop.f32.mrb[38].mxu1  ;;  %v1893_v10 = vadd.s32 4294967272, %v2938_v47 }
 0x67a   : > { %v1742_v39 = vadd.f32 %v1741_v13, %v1639_v7  ;;  %1785 = vrot.lane.b32.xlu0 %v1739_v15, %s2754_s6  ;;  %v2376_v31 = vpop.f32.mrb[39].mxu1  ;;  %v1900_v13 = vadd.s32 4294967264, %v2938_v47 }
 0x67c   : > { %1787 = vrot.lane.b32.xlu1 %v1742_v39, %s2754_s6 }
 0x67f   : > { %v1746_v1 = vpop.f32.mrb[40].mxu1 }
 0x680   : > { %v1747_v26 = vadd.f32 %v1746_v1, %v1639_v7  ;;  %v2379_v41 = vpop.f32.mrb[41].mxu1 }
 0x681   : > { %v1749_v45 = vpop.f32.mrb[42].mxu1 }
 0x682   : > { %v1750_v21 = vadd.f32 %v1749_v45, %v1639_v7  ;;  %1789 = vrot.lane.b32.xlu0 %v1747_v26, %s2754_s6  ;;  %v2380_v22 = vpop.f32.mrb[43].mxu1  ;;  %v1907_v45 = vadd.s32 4294967256, %v2938_v47 }
 0x684   : > { %1791 = vrot.lane.b32.xlu1 %v1750_v21, %s2754_s6 }
 0x687   : > { %v1754_v24 = vpop.f32.mrb[44].mxu1 }
 0x688   : > { %v1755_v43 = vadd.f32 %v1754_v24, %v1639_v7  ;;  %v2383_v6 = vpop.f32.mrb[45].mxu1  ;;  %v1896_v24 = vsub.s32 %v1893_v10, %v2909_v14 }
 0x689   : > { %v1757_v11 = vpop.f32.mrb[46].mxu1  ;;  %v1903_v6 = vsub.s32 %v1900_v13, %v2909_v14 }
 0x68a   : > { %v1758_v30 = vadd.f32 %v1757_v11, %v1639_v7  ;;  %1793 = vrot.lane.b32.xlu0 %v1755_v43, %s2754_s6  ;;  %v2384_v55 = vpop.f32.mrb[47].mxu1 }
 0x68b   : > { %v1914_v55 = vadd.s32 4294967248, %v2938_v47 }
 0x68c   : > { %1795 = vrot.lane.b32.xlu1 %v1758_v30, %s2754_s6 }
 0x68f   : > { %v1762_v62 = vpop.f32.mrb[48].mxu1 }
 0x690   : > { %v1763_v29 = vadd.f32 %v1762_v62, %v1639_v7  ;;  %v2387_v16 = vpop.f32.mrb[49].mxu1 }
 0x691   : > { %v1765_v56 = vpop.f32.mrb[50].mxu1 }
 0x692   : > { %v1766_v8 = vadd.f32 %v1765_v56, %v1639_v7  ;;  %1797 = vrot.lane.b32.xlu0 %v1763_v29, %s2754_s6  ;;  %v2388_v35 = vpop.f32.mrb[51].mxu1  ;;  %v1910_v56 = vsub.s32 %v1907_v45, %v2909_v14 }
 0x694   : > { %1799 = vrot.lane.b32.xlu1 %v1766_v8, %s2754_s6 }
 0x697   : > { %v1770_v4 = vpop.f32.mrb[52].mxu1 }
 0x698   : > { %v1771_v34 = vadd.f32 %v1770_v4, %v1639_v7  ;;  %v2391_v38 = vpop.f32.mrb[53].mxu1 }
 0x699   : > { %v1773_v37 = vpop.f32.mrb[54].mxu1  ;;  %v1928_v38 = vadd.s32 4294967232, %v2938_v47 }
 0x69a   : > { %v1774_v17 = vadd.f32 %v1773_v37, %v1639_v7  ;;  %1801 = vrot.lane.b32.xlu0 %v1771_v34, %s2754_s6  ;;  %v2392_v12 = vpop.f32.mrb[55].mxu1 }
 0x69c   : > { %1803 = vrot.lane.b32.xlu1 %v1774_v17, %s2754_s6 }
 0x6da   : > { %v1778_v61 = vpop.permute.xlu0 %1777 }
 0x6db   : > { %v1805_v33 = vmul.f32 %v1778_v61, %v1723_v57 }
 0x6dc   : > { %v1780_v44 = vpop.permute.xlu1 %1779 }
 0x6dd   : > { %v1806_v46 = vmul.f32 %v1780_v44, %v1726_v3  ;;  %1819 = vadd.xlane.f32.xlu0 %v1805_v33 }
 0x6df   : > { %1821 = vadd.xlane.f32.xlu1 %v1806_v46 }
 0x6e4   : > { %v1782_v58 = vpop.permute.xlu1 %1781 }
 0x6e5   : > { %v1807_v25 = vmul.f32 %v1782_v58, %v1731_v54 }
 0x6e7   : > { %1823 = vadd.xlane.f32.xlu0 %v1807_v25  ;;  %v1935_v25 = vadd.s32 4294967224, %v2938_v47 }
 0x6e8   : > { %v1784_v28 = vpop.permute.xlu1 %1783 }
 0x6e9   : > { %v1808_v42 = vmul.f32 %v1784_v28, %v1734_v51  ;;  %v1879_v51 = vadd.s32 4294967288, %v2938_v47 }
 0x6eb   : > { %1825 = vadd.xlane.f32.xlu0 %v1808_v42 }
 0x6ec   : > { %v1786_v18 = vpop.permute.xlu0 %1785 }
 0x6ed   : > { %v1809_v59 = vmul.f32 %v1786_v18, %v1739_v15  ;;  %v1886_v15 = vadd.s32 4294967280, %v2938_v47 }
 0x6ee   : > { %v1788_v63 = vpop.permute.xlu1 %1787 }
 0x6ef   : > { %v1810_v32 = vmul.f32 %v1788_v63, %v1742_v39  ;;  %1827 = vadd.xlane.f32.xlu0 %v1809_v59  ;;  %v1882_v39 = vsub.s32 %v1879_v51, %v2909_v14  ;;  %v1931_v59 = vsub.s32 %v1928_v38, %v2909_v14 }
 0x6f1   : > { %1829 = vadd.xlane.f32.xlu1 %v1810_v32 }
 0x6f4   : > { %v1790_v20 = vpop.permute.xlu0 %1789 }
 0x6f5   : > { %v1811_v53 = vmul.f32 %v1790_v20, %v1747_v26  ;;  %v1889_v26 = vsub.s32 %v1886_v15, %v2909_v14  ;;  %v1963_v15 = vadd.s32 4294967192, %v2938_v47 }
 0x6f6   : > { %v1792_v36 = vpop.permute.xlu1 %1791 }
 0x6f7   : > { %v1812_v50 = vmul.f32 %v1792_v36, %v1750_v21  ;;  %1831 = vadd.xlane.f32.xlu0 %v1811_v53  ;;  %v1877_v21 = vsub.s32 %v2938_v47, %v2909_v14  ;;  %v1942_v36 = vadd.s32 4294967216, %v2938_v47 }
 0x6f9   : > { %1833 = vadd.xlane.f32.xlu1 %v1812_v50  ;;  %v1938_v50 = vsub.s32 %v1935_v25, %v2909_v14 }
 0x6fc   : > { %v1794_v2 = vpop.permute.xlu0 %1793 }
 0x6fd   : > { %v1813_v23 = vmul.f32 %v1794_v2, %v1755_v43 }
 0x6fe   : > { %v1796_v52 = vpop.permute.xlu1 %1795 }
 0x6ff   : > { %v1814_v7 = vmul.f32 %v1796_v52, %v1758_v30  ;;  %1835 = vadd.xlane.f32.xlu0 %v1813_v23 }
 0x701   : > { %1837 = vadd.xlane.f32.xlu1 %v1814_v7 }
 0x704   : > { %v1798_v27 = vpop.permute.xlu0 %1797 }
 0x705   : > { %v1815_v57 = vmul.f32 %v1798_v27, %v1763_v29  ;;  %v1949_v27 = vadd.s32 4294967208, %v2938_v47 }
 0x706   : > { %v1800_v9 = vpop.permute.xlu1 %1799 }
 0x707   : > { %v1816_v60 = vmul.f32 %v1800_v9, %v1766_v8  ;;  %1839 = vadd.xlane.f32.xlu0 %v1815_v57  ;;  %v1921_v8 = vadd.s32 4294967240, %v2938_v47 }
 0x709   : > { %1841 = vadd.xlane.f32.xlu1 %v1816_v60  ;;  %v1924_v58 = vsub.s32 %v1921_v8, %v2909_v14  ;;  %v1945_v60 = vsub.s32 %v1942_v36, %v2909_v14 }
 0x70c   : > { %v1802_v3 = vpop.permute.xlu0 %1801 }
 0x70d   : > { %v1817_v0 = vmul.f32 %v1802_v3, %v1771_v34 }
 0x70e   : > { %v1804_v49 = vpop.permute.xlu1 %1803 }
 0x70f   : > { %v1818_v54 = vmul.f32 %v1804_v49, %v1774_v17  ;;  %1843 = vadd.xlane.f32.xlu0 %v1817_v0  ;;  %v1917_v17 = vsub.s32 %v1914_v55, %v2909_v14  ;;  %v1956_v49 = vadd.s32 4294967200, %v2938_v47 }
 0x711   : > { %1845 = vadd.xlane.f32.xlu1 %v1818_v54  ;;  %v1959_v10 = vsub.s32 %v1956_v49, %v2909_v14 }
 0x76a   : > { %v1820_v40 = vpop.xlane.xlu0 %1819 }
 0x76b   : > { %v1847_v22 = vmul.f32 0.5, %v1820_v40 }
 0x76c   : > { %v1822_v48 = vpop.xlane.xlu1 %1821 }
 0x76d   : > { %v1848_v31 = vmul.f32 0.5, %v1822_v48  ;;  %v1878_v35 = vrot.slane %v1847_v22, %v1877_v21 }
 0x76f   : > { %v1883_v62 = vrot.slane %v1848_v31, %v1882_v39 }
 0x771   : > { %v1885_v33 = vsel %vm1884_vm3, %v1883_v62, %v1878_v35 }
 0x774   : > { %v1824_v5 = vpop.xlane.xlu0 %1823 }
 0x775   : > { %v1849_v41 = vmul.f32 0.5, %v1824_v5  ;;  %v1952_v5 = vsub.s32 %v1949_v27, %v2909_v14 }
 0x777   : > { %v1890_v16 = vrot.slane %v1849_v41, %v1889_v26  ;;  %v1966_v41 = vsub.s32 %v1963_v15, %v2909_v14 }
 0x778   : > { %v1826_v19 = vpop.xlane.xlu0 %1825 }
 0x779   : > { %v1850_v43 = vmul.f32 0.5, %v1826_v19  ;;  %v1892_v46 = vsel %vm1891_vm4, %v1890_v16, %v1885_v33 }
 0x77b   : > { %v1897_v4 = vrot.slane %v1850_v43, %v1896_v24 }
 0x77c   : > { %v1828_v1 = vpop.xlane.xlu0 %1827 }
 0x77d   : > { %v1851_v11 = vmul.f32 0.5, %v1828_v1  ;;  %v1899_v28 = vsel %vm1898_vm5, %v1897_v4, %v1892_v46 }
 0x77e   : > { %v1830_v30 = vpop.xlane.xlu1 %1829 }
 0x77f   : > { %v1852_v34 = vmul.f32 0.5, %v1830_v30  ;;  %v1904_v37 = vrot.slane %v1851_v11, %v1903_v6 }
 0x781   : > { %v1911_v42 = vrot.slane %v1852_v34, %v1910_v56  ;;  %v1906_v63 = vsel %vm1905_vm6, %v1904_v37, %v1899_v28 }
 0x783   : > { %v1913_v2 = vsel %vm1912_vm7, %v1911_v42, %v1906_v63 }
 0x784   : > { %v1832_v29 = vpop.xlane.xlu0 %1831 }
 0x785   : > { %v1853_v12 = vmul.f32 0.5, %v1832_v29 }
 0x786   : > { %v1834_v61 = vpop.xlane.xlu1 %1833 }
 0x787   : > { %v1854_v18 = vmul.f32 0.5, %v1834_v61  ;;  %v1918_v32 = vrot.slane %v1853_v12, %v1917_v17 }
 0x789   : > { %v1925_v23 = vrot.slane %v1854_v18, %v1924_v58  ;;  %v1920_v57 = vsel %vm1919_vm8, %v1918_v32, %v1913_v2 }
 0x78b   : > { %v1927_v54 = vsel %vm1926_vm9, %v1925_v23, %v1920_v57 }
 0x78c   : > { %v1836_v44 = vpop.xlane.xlu0 %1835 }
 0x78d   : > { %v1855_v20 = vmul.f32 0.5, %v1836_v44 }
 0x78e   : > { %v1838_v53 = vpop.xlane.xlu1 %1837 }
 0x78f   : > { %v1856_v52 = vmul.f32 0.5, %v1838_v53  ;;  %v1932_v9 = vrot.slane %v1855_v20, %v1931_v59 }
 0x791   : > { %v1939_v40 = vrot.slane %v1856_v52, %v1938_v50  ;;  %v1934_v51 = vsel %vm1933_vm10, %v1932_v9, %v1927_v54 }
 0x793   : > { %v1941_v13 = vsel %vm1940_vm11, %v1939_v40, %v1934_v51 }
 0x794   : > { %v1840_v7 = vpop.xlane.xlu0 %1839 }
 0x795   : > { %v1857_v3 = vmul.f32 0.5, %v1840_v7 }
 0x796   : > { %v1842_v0 = vpop.xlane.xlu1 %1841 }
 0x797   : > { %v1858_v19 = vmul.f32 0.5, %v1842_v0  ;;  %v1946_v48 = vrot.slane %v1857_v3, %v1945_v60 }
 0x799   : > { %v1953_v39 = vrot.slane %v1858_v19, %v1952_v5  ;;  %v1948_v1 = vsel %vm1947_vm12, %v1946_v48, %v1941_v13 }
 0x79b   : > { %v1955_v47 = vsel %vm1954_vm13, %v1953_v39, %v1948_v1 }
 0x79c   : > { %v1844_v31 = vpop.xlane.xlu0 %1843 }
 0x79d   : > { %v1859_v26 = vmul.f32 0.5, %v1844_v31 }
 0x79e   : > { %v1846_v45 = vpop.xlane.xlu1 %1845 }
 0x79f   : > { %v1960_v21 = vrot.slane %v1859_v26, %v1959_v10  ;;  %v1860_v22 = vmul.f32 0.5, %v1846_v45 }
 0x7a1   : > { %v1962_v24 = vsel %vm1961_vm14, %v1960_v21, %v1955_v47  ;;  %v1967_v43 = vrot.slane %v1860_v22, %v1966_v41 }
 0x7a3   : > { %v1969_v14 = vsel %vm1968_vm15, %v1967_v43, %v1962_v24 }
 0x7a4   : > { %1972 = vst.msk [vmem:[%s205_s9] sm:$0x1] %vm1971_vm0, %v1969_v14 }
 0x7a5   : > { %2694 = shalt.err (!%p2691_p7)
}
 0x7a6   : > { %s2695_s27 = scalar_lea.hbm %s3895_s13, 16  ;;  %s2699_s30 = scalar_lea.hbm %s3941_s4, 32 }
 0x7a7   : > { %p2696_p8 = scmp.ne.s32.totalorder %s3895_s13, %s2695_s27  ;;  %p2700_p1 = scmp.lt.u32.totalorder %s3895_s13, %s3941_s4 }
 0x7a8   : > { %p2701_p0 = scmp.lt.u32.totalorder %s2699_s30, %s2695_s27  ;;  %p2703_p6 = scmp.lt.u32.totalorder %s2695_s27, %s3895_s13 }
 0x7a9   : > { %p2697_p11 = pnand %p2696_p8, %p3952_p9 }
 0x7aa   : > { %p2702_p5 = por %p2701_p0, %p2700_p1 }
 0x7ab   : > { %p2698_p13 = pneg %p2697_p11 }
 0x7ac   : > { %p2704_p10 = por %p2703_p6, %p2702_p5 }
 0x7ae   : > { %p2705_p12 = pnand %p2704_p10, %p2698_p13 }
 0x7b0   : > { %2708 = shalt.err (!%p2705_p12)
}
 0x7b1   : > { %2397 = dma.vmem_to_hbm [thread:$0]  (%p3952_p9), %s3897_s10, 16, %s3895_s13, %s1974_s19  }
 0x7b2 PF: > { %p2409_p2 = scmp.ge.s32.totalorder %s2747_s18, 2  ;;  %s1998_s7 = sand.u32 1, %s2735_s15  }
 0x7b3   : > { %p3953_p3 = scmp.ne.s32.totalorder %s3946_s26, 0  ;;  %s1999_s8 = scalar_lea.sflag [#allocation4], %s1998_s7 }
 0x7b5   : > { %p2404_p4 = pnand %p2409_p2, %p3953_p3 }
 0x7b7   : > { %2730 = dma.done.wait (!%p2404_p4), %s1999_s8, 16  }
 0x7b8   : > { %2732 = vsyncadd (!%p2404_p4), %s1999_s8, 4294967280  ;;  %p15_p7 = scmp.ge.s32.totalorder %s2806_s21, 4   ;;  %s3954_s15 = smov %s2739_s16 }
 0x7b9   : > { %s3955_s16 = smov %s2743_s17  ;;  %s3956_s17 = smov %s2817_s24 }
 0x7ba   : > { %s3957_s18 = smov %s2806_s21  ;;  %17 = sbr.rel (!%p15_p7) target bundleno = 4 (0x4), region = 78 }
 0x7c1   :  { %2003 = vsyncpa [#allocation3], 1 }
 0x7c2   :  { %2005 = vsyncpa [#allocation3 + $0x1], 1 }
 0x7c3   :  { %2006 = vsyncpa [#allocation4], 1 }
 0x7c4   :  { %2008 = vsyncpa [#allocation4 + $0x1], 1 }

</bundles_post_ra>
